<compile_context>
chip_gen: v5e
topology: v5e:2x2
jax: 0.10.0
libtpu: 0.0.40
codegen_flags: <defaults>
</compile_context>

<pallas_src>
import functools

import jax
import jax.numpy as jnp
import numpy as np
from jax import lax
from jax.experimental import pallas as pl
from jax.experimental.pallas import tpu as pltpu


def _spectral_loss_kernel(x_ref, rsel_ref, wcol_ref, lab_ref, out_ref, *, C, kh):
    # x_ref   : (1, C, H, W)      current batch element, all channels
    # rsel_ref: (kh, Hs, H)       constant 0/1 row-select matrices (shared by all channels)
    # wcol_ref: (C, kh, W, Ws)    constant weighted column-select matrices
    # lab_ref : (1, C, Hs, Ws)    pre-sliced labels for this batch element
    # out_ref : (1, 8, 128)       per-batch partial |.|-sum (lane-dense store)
    total = jnp.zeros((1, 1), jnp.float32)
    for c in range(C):                      # static unrolled loop over channels
        x_c = x_ref[0, c]                   # (H, W)
        sub = None
        for a in range(kh):                 # static unrolled loop over kernel rows (MXU work)
            y = jnp.dot(rsel_ref[a], x_c,
                        preferred_element_type=jnp.float32)          # (Hs, W)  row gather
            t = jnp.dot(y, wcol_ref[c, a],
                        preferred_element_type=jnp.float32)          # (Hs, Ws) weighted cols
            sub = t if sub is None else sub + t
        diff = jnp.abs(sub - lab_ref[0, c])                           # (Hs, Ws)
        total = total + jnp.sum(diff, keepdims=True)
    # Lane-dense, unmasked store of the per-batch partial sum (read back as out[n, 0, 0]).
    out_ref[...] = jnp.broadcast_to(total, out_ref.shape)


def _make_selection_mats(weight_np, ratio, H, W, kh, kw, Hs, Ws):
    """Host-side (numpy, static shapes) construction of the fused conv+subsample matrices."""
    C = weight_np.shape[0]
    rsel = np.zeros((kh, Hs, H), np.float32)
    p = np.arange(Hs)
    for a in range(kh):
        rsel[a, p, 3 + a + ratio * p] = 1.0           # picks x rows 3 + a + ratio*p
    wcol = np.zeros((C, kh, W, Ws), np.float32)
    q = np.arange(Ws)
    for a in range(kh):
        for b in range(kw):
            wcol[:, a, 3 + b + ratio * q, q] = weight_np[:, a, b][:, None]
    return jnp.asarray(rsel), jnp.asarray(wcol)


def spectral_loss(outputs, labels, weight, ratio):
    outputs = jnp.asarray(outputs, jnp.float32)
    labels = jnp.asarray(labels, jnp.float32)
    weight_np = np.asarray(weight, np.float32)

    N, C, H, W = outputs.shape
    Cw, kh, kw = weight_np.shape
    assert Cw == C, "weight must have one (kh, kw) kernel per band"
    _, _, Hl, Wl = labels.shape

    cut = (kh // 2) // ratio
    assert cut > 0, ("cut_border = (kh//2)//ratio == 0: the module's labels[:, :, cut:-cut] "
                     "slice would be empty (kh must be >= 2*ratio).")
    Hc, Wc = H - kh + 1, W - kw + 1
    assert Hc > 3 and Wc > 3, "subsample phase 3 (hardcoded in the module) needs Hc, Wc > 3"
    Hs = (Hc - 3 + ratio - 1) // ratio   # len(range(3, Hc, ratio))
    Ws = (Wc - 3 + ratio - 1) // ratio
    # TODO(synk): bilinear-interpolation fallback path not supported.
    assert (Hs, Ws) == (Hl - 2 * cut, Wl - 2 * cut), "shape-mismatch (interpolate) path not supported"

    rsel, wcol = _make_selection_mats(weight_np, ratio, H, W, kh, kw, Hs, Ws)
    labels_sliced = labels[:, :, cut:Hl - cut, cut:Wl - cut]   # host-side border cut

    kernel = functools.partial(_spectral_loss_kernel, C=C, kh=kh)

    partials = pl.pallas_call(
        kernel,
        out_shape=jax.ShapeDtypeStruct((N, 8, 128), jnp.float32),
        grid_spec=pltpu.PrefetchScalarGridSpec(
            num_scalar_prefetch=0,
            grid=(N,),
            in_specs=[
                pl.BlockSpec((1, C, H, W), lambda n: (n, 0, 0, 0)),      # all channels of batch n
                pl.BlockSpec((kh, Hs, H), lambda n: (0, 0, 0)),          # constant, stays resident
                pl.BlockSpec((C, kh, W, Ws), lambda n: (0, 0, 0, 0)),    # constant, stays resident
                pl.BlockSpec((1, C, Hs, Ws), lambda n: (n, 0, 0, 0)),    # pre-sliced labels
            ],
            out_specs=pl.BlockSpec((1, 8, 128), lambda n: (n, 0, 0)),    # per-n partial sum tile
        ),
        compiler_params=pltpu.CompilerParams(
            dimension_semantics=("parallel",)),                           # shardable on v7x
    )(outputs, rsel, wcol, labels_sliced)

    inv_count = 1.0 / float(N * C * Hs * Ws)
    return jnp.sum(partials[:, 0, 0]) * inv_count                        # L1Loss(reduction='mean')


def spectral_loss_ref(outputs, labels, weight, ratio):
    """Pure-JAX reference replicating the PyTorch forward."""
    C, kh, _ = weight.shape
    cut = (kh // 2) // ratio
    w = weight[:, None, :, :]                                   # (C, 1, kh, kw)
    conv = lax.conv_general_dilated(
        outputs, w, window_strides=(1, 1), padding="VALID",
        dimension_numbers=("NCHW", "OIHW", "NCHW"), feature_group_count=C)
    sub = conv[:, :, 3::ratio, 3::ratio]
    lab = labels[:, :, cut:-cut, cut:-cut]
    return jnp.mean(jnp.abs(sub - lab))


if __name__ == "__main__":
    N, C, H, W = 2, 4, 32, 32
    ratio = 4
    kh = kw = 9
    Hl, Wl = H // ratio, W // ratio

    # Deterministic MTF-like Gaussian kernels, one per band, normalized to sum 1
    # (same content as the torch module's depthwise weight (nbands, 1, kh, kw)).
    yy, xx = np.meshgrid(np.arange(kh) - kh // 2, np.arange(kw) - kw // 2, indexing="ij")
    mtf = np.stack(
        [np.exp(-(xx ** 2 + yy ** 2) / (2.0 * (1.0 + 0.3 * c) ** 2)) for c in range(C)],
        axis=0).astype(np.float32)
    mtf /= mtf.sum(axis=(1, 2), keepdims=True)
    weight = jnp.asarray(mtf)                                   # (C, kh, kw)

    key = jax.random.PRNGKey(0)
    k1, k2 = jax.random.split(key)
    outputs = jax.random.normal(k1, (N, C, H, W), dtype=jnp.float32)
    labels = jax.random.normal(k2, (N, C, Hl, Wl), dtype=jnp.float32)

    loss = spectral_loss(outputs, labels, weight, ratio)
    loss = jax.block_until_ready(loss)

    ref = spectral_loss_ref(outputs, labels, weight, ratio)
    assert np.allclose(np.asarray(loss), np.asarray(ref), rtol=1e-4, atol=1e-5), (loss, ref)

    print("KERNEL_OK")
</pallas_src>

<mosaic_0001>
module attributes {stable_mosaic.version = 11 : i64} {
  func.func @_spectral_loss_kernel(%arg0: i32, %arg1: memref<1x4x32x32xf32, #tpu.memory_space<vmem>>, %arg2: memref<9x6x32xf32, #tpu.memory_space<vmem>>, %arg3: memref<4x9x32x6xf32, #tpu.memory_space<vmem>>, %arg4: memref<1x4x6x6xf32, #tpu.memory_space<vmem>>, %arg5: memref<1x8x128xf32, #tpu.memory_space<vmem>>) attributes {dimension_semantics = [#tpu.dimension_semantics<parallel>], iteration_bounds = array<i64: 2>, scalar_prefetch = 0 : i64, scratch_operands = 0 : i64, tpu.core_type = #tpu.core_type<tc>, window_params = [{transform_indices = @transform_0, window_bounds = array<i64: 1, 4, 32, 32>}, {pipeline_mode = #tpu.pipeline_mode<synchronous>, transform_indices = @transform_1, window_bounds = array<i64: 9, 6, 32>}, {pipeline_mode = #tpu.pipeline_mode<synchronous>, transform_indices = @transform_2, window_bounds = array<i64: 4, 9, 32, 6>}, {transform_indices = @transform_3, window_bounds = array<i64: 1, 4, 6, 6>}, {transform_indices = @transform_4, window_bounds = array<i64: 1, 8, 128>}]} {
    %cst = arith.constant 0.000000e+00 : f32
    %0 = vector.broadcast %cst : f32 to vector<1x1xf32>
    %c0 = arith.constant 0 : index
    %c0_0 = arith.constant 0 : index
    %c0_1 = arith.constant 0 : index
    %c0_2 = arith.constant 0 : index
    %1 = vector.load %arg1[%c0, %c0_0, %c0_1, %c0_2] : memref<1x4x32x32xf32, #tpu.memory_space<vmem>>, vector<1x1x32x32xf32>
    %2 = vector.shape_cast %1 : vector<1x1x32x32xf32> to vector<32x32xf32>
    %c0_3 = arith.constant 0 : index
    %c0_4 = arith.constant 0 : index
    %c0_5 = arith.constant 0 : index
    %3 = vector.load %arg2[%c0_3, %c0_4, %c0_5] : memref<9x6x32xf32, #tpu.memory_space<vmem>>, vector<1x6x32xf32>
    %4 = vector.shape_cast %3 : vector<1x6x32xf32> to vector<6x32xf32>
    %cst_6 = arith.constant dense<0.000000e+00> : vector<6x32xf32>
    %5 = tpu.matmul %4, %2, %cst_6 {dimension_numbers = #tpu.dot_dimension_numbers<[1], [0], [0], [1], [0, 0, 1, 1], [], []>} : vector<6x32xf32>, vector<32x32xf32>, vector<6x32xf32> -> vector<6x32xf32>
    %c0_7 = arith.constant 0 : index
    %c0_8 = arith.constant 0 : index
    %c0_9 = arith.constant 0 : index
    %c0_10 = arith.constant 0 : index
    %6 = vector.load %arg3[%c0_7, %c0_8, %c0_9, %c0_10] : memref<4x9x32x6xf32, #tpu.memory_space<vmem>>, vector<1x1x32x6xf32>
    %7 = vector.shape_cast %6 : vector<1x1x32x6xf32> to vector<32x6xf32>
    %cst_11 = arith.constant dense<0.000000e+00> : vector<6x6xf32>
    %8 = tpu.matmul %5, %7, %cst_11 {dimension_numbers = #tpu.dot_dimension_numbers<[1], [0], [0], [1], [0, 0, 1, 1], [], []>} : vector<6x32xf32>, vector<32x6xf32>, vector<6x6xf32> -> vector<6x6xf32>
    %c1 = arith.constant 1 : index
    %c0_12 = arith.constant 0 : index
    %c0_13 = arith.constant 0 : index
    %9 = vector.load %arg2[%c1, %c0_12, %c0_13] : memref<9x6x32xf32, #tpu.memory_space<vmem>>, vector<1x6x32xf32>
    %10 = vector.shape_cast %9 : vector<1x6x32xf32> to vector<6x32xf32>
    %cst_14 = arith.constant dense<0.000000e+00> : vector<6x32xf32>
    %11 = tpu.matmul %10, %2, %cst_14 {dimension_numbers = #tpu.dot_dimension_numbers<[1], [0], [0], [1], [0, 0, 1, 1], [], []>} : vector<6x32xf32>, vector<32x32xf32>, vector<6x32xf32> -> vector<6x32xf32>
    %c0_15 = arith.constant 0 : index
    %c1_16 = arith.constant 1 : index
    %c0_17 = arith.constant 0 : index
    %c0_18 = arith.constant 0 : index
    %12 = vector.load %arg3[%c0_15, %c1_16, %c0_17, %c0_18] : memref<4x9x32x6xf32, #tpu.memory_space<vmem>>, vector<1x1x32x6xf32>
    %13 = vector.shape_cast %12 : vector<1x1x32x6xf32> to vector<32x6xf32>
    %cst_19 = arith.constant dense<0.000000e+00> : vector<6x6xf32>
    %14 = tpu.matmul %11, %13, %cst_19 {dimension_numbers = #tpu.dot_dimension_numbers<[1], [0], [0], [1], [0, 0, 1, 1], [], []>} : vector<6x32xf32>, vector<32x6xf32>, vector<6x6xf32> -> vector<6x6xf32>
    %15 = arith.addf %8, %14 : vector<6x6xf32>
    %c2 = arith.constant 2 : index
    %c0_20 = arith.constant 0 : index
    %c0_21 = arith.constant 0 : index
    %16 = vector.load %arg2[%c2, %c0_20, %c0_21] : memref<9x6x32xf32, #tpu.memory_space<vmem>>, vector<1x6x32xf32>
    %17 = vector.shape_cast %16 : vector<1x6x32xf32> to vector<6x32xf32>
    %cst_22 = arith.constant dense<0.000000e+00> : vector<6x32xf32>
    %18 = tpu.matmul %17, %2, %cst_22 {dimension_numbers = #tpu.dot_dimension_numbers<[1], [0], [0], [1], [0, 0, 1, 1], [], []>} : vector<6x32xf32>, vector<32x32xf32>, vector<6x32xf32> -> vector<6x32xf32>
    %c0_23 = arith.constant 0 : index
    %c2_24 = arith.constant 2 : index
    %c0_25 = arith.constant 0 : index
    %c0_26 = arith.constant 0 : index
    %19 = vector.load %arg3[%c0_23, %c2_24, %c0_25, %c0_26] : memref<4x9x32x6xf32, #tpu.memory_space<vmem>>, vector<1x1x32x6xf32>
    %20 = vector.shape_cast %19 : vector<1x1x32x6xf32> to vector<32x6xf32>
    %cst_27 = arith.constant dense<0.000000e+00> : vector<6x6xf32>
    %21 = tpu.matmul %18, %20, %cst_27 {dimension_numbers = #tpu.dot_dimension_numbers<[1], [0], [0], [1], [0, 0, 1, 1], [], []>} : vector<6x32xf32>, vector<32x6xf32>, vector<6x6xf32> -> vector<6x6xf32>
    %22 = arith.addf %15, %21 : vector<6x6xf32>
    %c3 = arith.constant 3 : index
    %c0_28 = arith.constant 0 : index
    %c0_29 = arith.constant 0 : index
    %23 = vector.load %arg2[%c3, %c0_28, %c0_29] : memref<9x6x32xf32, #tpu.memory_space<vmem>>, vector<1x6x32xf32>
    %24 = vector.shape_cast %23 : vector<1x6x32xf32> to vector<6x32xf32>
    %cst_30 = arith.constant dense<0.000000e+00> : vector<6x32xf32>
    %25 = tpu.matmul %24, %2, %cst_30 {dimension_numbers = #tpu.dot_dimension_numbers<[1], [0], [0], [1], [0, 0, 1, 1], [], []>} : vector<6x32xf32>, vector<32x32xf32>, vector<6x32xf32> -> vector<6x32xf32>
    %c0_31 = arith.constant 0 : index
    %c3_32 = arith.constant 3 : index
    %c0_33 = arith.constant 0 : index
    %c0_34 = arith.constant 0 : index
    %26 = vector.load %arg3[%c0_31, %c3_32, %c0_33, %c0_34] : memref<4x9x32x6xf32, #tpu.memory_space<vmem>>, vector<1x1x32x6xf32>
    %27 = vector.shape_cast %26 : vector<1x1x32x6xf32> to vector<32x6xf32>
    %cst_35 = arith.constant dense<0.000000e+00> : vector<6x6xf32>
    %28 = tpu.matmul %25, %27, %cst_35 {dimension_numbers = #tpu.dot_dimension_numbers<[1], [0], [0], [1], [0, 0, 1, 1], [], []>} : vector<6x32xf32>, vector<32x6xf32>, vector<6x6xf32> -> vector<6x6xf32>
    %29 = arith.addf %22, %28 : vector<6x6xf32>
    %c4 = arith.constant 4 : index
    %c0_36 = arith.constant 0 : index
    %c0_37 = arith.constant 0 : index
    %30 = vector.load %arg2[%c4, %c0_36, %c0_37] : memref<9x6x32xf32, #tpu.memory_space<vmem>>, vector<1x6x32xf32>
    %31 = vector.shape_cast %30 : vector<1x6x32xf32> to vector<6x32xf32>
    %cst_38 = arith.constant dense<0.000000e+00> : vector<6x32xf32>
    %32 = tpu.matmul %31, %2, %cst_38 {dimension_numbers = #tpu.dot_dimension_numbers<[1], [0], [0], [1], [0, 0, 1, 1], [], []>} : vector<6x32xf32>, vector<32x32xf32>, vector<6x32xf32> -> vector<6x32xf32>
    %c0_39 = arith.constant 0 : index
    %c4_40 = arith.constant 4 : index
    %c0_41 = arith.constant 0 : index
    %c0_42 = arith.constant 0 : index
    %33 = vector.load %arg3[%c0_39, %c4_40, %c0_41, %c0_42] : memref<4x9x32x6xf32, #tpu.memory_space<vmem>>, vector<1x1x32x6xf32>
    %34 = vector.shape_cast %33 : vector<1x1x32x6xf32> to vector<32x6xf32>
    %cst_43 = arith.constant dense<0.000000e+00> : vector<6x6xf32>
    %35 = tpu.matmul %32, %34, %cst_43 {dimension_numbers = #tpu.dot_dimension_numbers<[1], [0], [0], [1], [0, 0, 1, 1], [], []>} : vector<6x32xf32>, vector<32x6xf32>, vector<6x6xf32> -> vector<6x6xf32>
    %36 = arith.addf %29, %35 : vector<6x6xf32>
    %c5 = arith.constant 5 : index
    %c0_44 = arith.constant 0 : index
    %c0_45 = arith.constant 0 : index
    %37 = vector.load %arg2[%c5, %c0_44, %c0_45] : memref<9x6x32xf32, #tpu.memory_space<vmem>>, vector<1x6x32xf32>
    %38 = vector.shape_cast %37 : vector<1x6x32xf32> to vector<6x32xf32>
    %cst_46 = arith.constant dense<0.000000e+00> : vector<6x32xf32>
    %39 = tpu.matmul %38, %2, %cst_46 {dimension_numbers = #tpu.dot_dimension_numbers<[1], [0], [0], [1], [0, 0, 1, 1], [], []>} : vector<6x32xf32>, vector<32x32xf32>, vector<6x32xf32> -> vector<6x32xf32>
    %c0_47 = arith.constant 0 : index
    %c5_48 = arith.constant 5 : index
    %c0_49 = arith.constant 0 : index
    %c0_50 = arith.constant 0 : index
    %40 = vector.load %arg3[%c0_47, %c5_48, %c0_49, %c0_50] : memref<4x9x32x6xf32, #tpu.memory_space<vmem>>, vector<1x1x32x6xf32>
    %41 = vector.shape_cast %40 : vector<1x1x32x6xf32> to vector<32x6xf32>
    %cst_51 = arith.constant dense<0.000000e+00> : vector<6x6xf32>
    %42 = tpu.matmul %39, %41, %cst_51 {dimension_numbers = #tpu.dot_dimension_numbers<[1], [0], [0], [1], [0, 0, 1, 1], [], []>} : vector<6x32xf32>, vector<32x6xf32>, vector<6x6xf32> -> vector<6x6xf32>
    %43 = arith.addf %36, %42 : vector<6x6xf32>
    %c6 = arith.constant 6 : index
    %c0_52 = arith.constant 0 : index
    %c0_53 = arith.constant 0 : index
    %44 = vector.load %arg2[%c6, %c0_52, %c0_53] : memref<9x6x32xf32, #tpu.memory_space<vmem>>, vector<1x6x32xf32>
    %45 = vector.shape_cast %44 : vector<1x6x32xf32> to vector<6x32xf32>
    %cst_54 = arith.constant dense<0.000000e+00> : vector<6x32xf32>
    %46 = tpu.matmul %45, %2, %cst_54 {dimension_numbers = #tpu.dot_dimension_numbers<[1], [0], [0], [1], [0, 0, 1, 1], [], []>} : vector<6x32xf32>, vector<32x32xf32>, vector<6x32xf32> -> vector<6x32xf32>
    %c0_55 = arith.constant 0 : index
    %c6_56 = arith.constant 6 : index
    %c0_57 = arith.constant 0 : index
    %c0_58 = arith.constant 0 : index
    %47 = vector.load %arg3[%c0_55, %c6_56, %c0_57, %c0_58] : memref<4x9x32x6xf32, #tpu.memory_space<vmem>>, vector<1x1x32x6xf32>
    %48 = vector.shape_cast %47 : vector<1x1x32x6xf32> to vector<32x6xf32>
    %cst_59 = arith.constant dense<0.000000e+00> : vector<6x6xf32>
    %49 = tpu.matmul %46, %48, %cst_59 {dimension_numbers = #tpu.dot_dimension_numbers<[1], [0], [0], [1], [0, 0, 1, 1], [], []>} : vector<6x32xf32>, vector<32x6xf32>, vector<6x6xf32> -> vector<6x6xf32>
    %50 = arith.addf %43, %49 : vector<6x6xf32>
    %c7 = arith.constant 7 : index
    %c0_60 = arith.constant 0 : index
    %c0_61 = arith.constant 0 : index
    %51 = vector.load %arg2[%c7, %c0_60, %c0_61] : memref<9x6x32xf32, #tpu.memory_space<vmem>>, vector<1x6x32xf32>
    %52 = vector.shape_cast %51 : vector<1x6x32xf32> to vector<6x32xf32>
    %cst_62 = arith.constant dense<0.000000e+00> : vector<6x32xf32>
    %53 = tpu.matmul %52, %2, %cst_62 {dimension_numbers = #tpu.dot_dimension_numbers<[1], [0], [0], [1], [0, 0, 1, 1], [], []>} : vector<6x32xf32>, vector<32x32xf32>, vector<6x32xf32> -> vector<6x32xf32>
    %c0_63 = arith.constant 0 : index
    %c7_64 = arith.constant 7 : index
    %c0_65 = arith.constant 0 : index
    %c0_66 = arith.constant 0 : index
    %54 = vector.load %arg3[%c0_63, %c7_64, %c0_65, %c0_66] : memref<4x9x32x6xf32, #tpu.memory_space<vmem>>, vector<1x1x32x6xf32>
    %55 = vector.shape_cast %54 : vector<1x1x32x6xf32> to vector<32x6xf32>
    %cst_67 = arith.constant dense<0.000000e+00> : vector<6x6xf32>
    %56 = tpu.matmul %53, %55, %cst_67 {dimension_numbers = #tpu.dot_dimension_numbers<[1], [0], [0], [1], [0, 0, 1, 1], [], []>} : vector<6x32xf32>, vector<32x6xf32>, vector<6x6xf32> -> vector<6x6xf32>
    %57 = arith.addf %50, %56 : vector<6x6xf32>
    %c8 = arith.constant 8 : index
    %c0_68 = arith.constant 0 : index
    %c0_69 = arith.constant 0 : index
    %58 = vector.load %arg2[%c8, %c0_68, %c0_69] : memref<9x6x32xf32, #tpu.memory_space<vmem>>, vector<1x6x32xf32>
    %59 = vector.shape_cast %58 : vector<1x6x32xf32> to vector<6x32xf32>
    %cst_70 = arith.constant dense<0.000000e+00> : vector<6x32xf32>
    %60 = tpu.matmul %59, %2, %cst_70 {dimension_numbers = #tpu.dot_dimension_numbers<[1], [0], [0], [1], [0, 0, 1, 1], [], []>} : vector<6x32xf32>, vector<32x32xf32>, vector<6x32xf32> -> vector<6x32xf32>
    %c0_71 = arith.constant 0 : index
    %c8_72 = arith.constant 8 : index
    %c0_73 = arith.constant 0 : index
    %c0_74 = arith.constant 0 : index
    %61 = vector.load %arg3[%c0_71, %c8_72, %c0_73, %c0_74] : memref<4x9x32x6xf32, #tpu.memory_space<vmem>>, vector<1x1x32x6xf32>
    %62 = vector.shape_cast %61 : vector<1x1x32x6xf32> to vector<32x6xf32>
    %cst_75 = arith.constant dense<0.000000e+00> : vector<6x6xf32>
    %63 = tpu.matmul %60, %62, %cst_75 {dimension_numbers = #tpu.dot_dimension_numbers<[1], [0], [0], [1], [0, 0, 1, 1], [], []>} : vector<6x32xf32>, vector<32x6xf32>, vector<6x6xf32> -> vector<6x6xf32>
    %64 = arith.addf %57, %63 : vector<6x6xf32>
    %c0_76 = arith.constant 0 : index
    %c0_77 = arith.constant 0 : index
    %c0_78 = arith.constant 0 : index
    %c0_79 = arith.constant 0 : index
    %65 = vector.load %arg4[%c0_76, %c0_77, %c0_78, %c0_79] : memref<1x4x6x6xf32, #tpu.memory_space<vmem>>, vector<1x1x6x6xf32>
    %66 = vector.shape_cast %65 : vector<1x1x6x6xf32> to vector<6x6xf32>
    %67 = arith.subf %64, %66 : vector<6x6xf32>
    %68 = math.absf %67 : vector<6x6xf32>
    %69 = vector.shape_cast %68 : vector<6x6xf32> to vector<1x6x6xf32>
    %cst_80 = arith.constant dense<0.000000e+00> : vector<1xf32>
    %70 = vector.multi_reduction <add>, %69, %cst_80 [1, 2] : vector<1x6x6xf32> to vector<1xf32>
    %71 = vector.shape_cast %70 : vector<1xf32> to vector<1x1x1xf32>
    %72 = vector.extract %71[0, 0, 0] : f32 from vector<1x1x1xf32>
    %73 = vector.broadcast %72 : f32 to vector<1x1xf32>
    %74 = arith.addf %0, %73 : vector<1x1xf32>
    %c0_81 = arith.constant 0 : index
    %c1_82 = arith.constant 1 : index
    %c0_83 = arith.constant 0 : index
    %c0_84 = arith.constant 0 : index
    %75 = vector.load %arg1[%c0_81, %c1_82, %c0_83, %c0_84] : memref<1x4x32x32xf32, #tpu.memory_space<vmem>>, vector<1x1x32x32xf32>
    %76 = vector.shape_cast %75 : vector<1x1x32x32xf32> to vector<32x32xf32>
    %c0_85 = arith.constant 0 : index
    %c0_86 = arith.constant 0 : index
    %c0_87 = arith.constant 0 : index
    %77 = vector.load %arg2[%c0_85, %c0_86, %c0_87] : memref<9x6x32xf32, #tpu.memory_space<vmem>>, vector<1x6x32xf32>
    %78 = vector.shape_cast %77 : vector<1x6x32xf32> to vector<6x32xf32>
    %cst_88 = arith.constant dense<0.000000e+00> : vector<6x32xf32>
    %79 = tpu.matmul %78, %76, %cst_88 {dimension_numbers = #tpu.dot_dimension_numbers<[1], [0], [0], [1], [0, 0, 1, 1], [], []>} : vector<6x32xf32>, vector<32x32xf32>, vector<6x32xf32> -> vector<6x32xf32>
    %c1_89 = arith.constant 1 : index
    %c0_90 = arith.constant 0 : index
    %c0_91 = arith.constant 0 : index
    %c0_92 = arith.constant 0 : index
    %80 = vector.load %arg3[%c1_89, %c0_90, %c0_91, %c0_92] : memref<4x9x32x6xf32, #tpu.memory_space<vmem>>, vector<1x1x32x6xf32>
    %81 = vector.shape_cast %80 : vector<1x1x32x6xf32> to vector<32x6xf32>
    %cst_93 = arith.constant dense<0.000000e+00> : vector<6x6xf32>
    %82 = tpu.matmul %79, %81, %cst_93 {dimension_numbers = #tpu.dot_dimension_numbers<[1], [0], [0], [1], [0, 0, 1, 1], [], []>} : vector<6x32xf32>, vector<32x6xf32>, vector<6x6xf32> -> vector<6x6xf32>
    %c1_94 = arith.constant 1 : index
    %c0_95 = arith.constant 0 : index
    %c0_96 = arith.constant 0 : index
    %83 = vector.load %arg2[%c1_94, %c0_95, %c0_96] : memref<9x6x32xf32, #tpu.memory_space<vmem>>, vector<1x6x32xf32>
    %84 = vector.shape_cast %83 : vector<1x6x32xf32> to vector<6x32xf32>
    %cst_97 = arith.constant dense<0.000000e+00> : vector<6x32xf32>
    %85 = tpu.matmul %84, %76, %cst_97 {dimension_numbers = #tpu.dot_dimension_numbers<[1], [0], [0], [1], [0, 0, 1, 1], [], []>} : vector<6x32xf32>, vector<32x32xf32>, vector<6x32xf32> -> vector<6x32xf32>
    %c1_98 = arith.constant 1 : index
    %c1_99 = arith.constant 1 : index
    %c0_100 = arith.constant 0 : index
    %c0_101 = arith.constant 0 : index
    %86 = vector.load %arg3[%c1_98, %c1_99, %c0_100, %c0_101] : memref<4x9x32x6xf32, #tpu.memory_space<vmem>>, vector<1x1x32x6xf32>
    %87 = vector.shape_cast %86 : vector<1x1x32x6xf32> to vector<32x6xf32>
    %cst_102 = arith.constant dense<0.000000e+00> : vector<6x6xf32>
    %88 = tpu.matmul %85, %87, %cst_102 {dimension_numbers = #tpu.dot_dimension_numbers<[1], [0], [0], [1], [0, 0, 1, 1], [], []>} : vector<6x32xf32>, vector<32x6xf32>, vector<6x6xf32> -> vector<6x6xf32>
    %89 = arith.addf %82, %88 : vector<6x6xf32>
    %c2_103 = arith.constant 2 : index
    %c0_104 = arith.constant 0 : index
    %c0_105 = arith.constant 0 : index
    %90 = vector.load %arg2[%c2_103, %c0_104, %c0_105] : memref<9x6x32xf32, #tpu.memory_space<vmem>>, vector<1x6x32xf32>
    %91 = vector.shape_cast %90 : vector<1x6x32xf32> to vector<6x32xf32>
    %cst_106 = arith.constant dense<0.000000e+00> : vector<6x32xf32>
    %92 = tpu.matmul %91, %76, %cst_106 {dimension_numbers = #tpu.dot_dimension_numbers<[1], [0], [0], [1], [0, 0, 1, 1], [], []>} : vector<6x32xf32>, vector<32x32xf32>, vector<6x32xf32> -> vector<6x32xf32>
    %c1_107 = arith.constant 1 : index
    %c2_108 = arith.constant 2 : index
    %c0_109 = arith.constant 0 : index
    %c0_110 = arith.constant 0 : index
    %93 = vector.load %arg3[%c1_107, %c2_108, %c0_109, %c0_110] : memref<4x9x32x6xf32, #tpu.memory_space<vmem>>, vector<1x1x32x6xf32>
    %94 = vector.shape_cast %93 : vector<1x1x32x6xf32> to vector<32x6xf32>
    %cst_111 = arith.constant dense<0.000000e+00> : vector<6x6xf32>
    %95 = tpu.matmul %92, %94, %cst_111 {dimension_numbers = #tpu.dot_dimension_numbers<[1], [0], [0], [1], [0, 0, 1, 1], [], []>} : vector<6x32xf32>, vector<32x6xf32>, vector<6x6xf32> -> vector<6x6xf32>
    %96 = arith.addf %89, %95 : vector<6x6xf32>
    %c3_112 = arith.constant 3 : index
    %c0_113 = arith.constant 0 : index
    %c0_114 = arith.constant 0 : index
    %97 = vector.load %arg2[%c3_112, %c0_113, %c0_114] : memref<9x6x32xf32, #tpu.memory_space<vmem>>, vector<1x6x32xf32>
    %98 = vector.shape_cast %97 : vector<1x6x32xf32> to vector<6x32xf32>
    %cst_115 = arith.constant dense<0.000000e+00> : vector<6x32xf32>
    %99 = tpu.matmul %98, %76, %cst_115 {dimension_numbers = #tpu.dot_dimension_numbers<[1], [0], [0], [1], [0, 0, 1, 1], [], []>} : vector<6x32xf32>, vector<32x32xf32>, vector<6x32xf32> -> vector<6x32xf32>
    %c1_116 = arith.constant 1 : index
    %c3_117 = arith.constant 3 : index
    %c0_118 = arith.constant 0 : index
    %c0_119 = arith.constant 0 : index
    %100 = vector.load %arg3[%c1_116, %c3_117, %c0_118, %c0_119] : memref<4x9x32x6xf32, #tpu.memory_space<vmem>>, vector<1x1x32x6xf32>
    %101 = vector.shape_cast %100 : vector<1x1x32x6xf32> to vector<32x6xf32>
    %cst_120 = arith.constant dense<0.000000e+00> : vector<6x6xf32>
    %102 = tpu.matmul %99, %101, %cst_120 {dimension_numbers = #tpu.dot_dimension_numbers<[1], [0], [0], [1], [0, 0, 1, 1], [], []>} : vector<6x32xf32>, vector<32x6xf32>, vector<6x6xf32> -> vector<6x6xf32>
    %103 = arith.addf %96, %102 : vector<6x6xf32>
    %c4_121 = arith.constant 4 : index
    %c0_122 = arith.constant 0 : index
    %c0_123 = arith.constant 0 : index
    %104 = vector.load %arg2[%c4_121, %c0_122, %c0_123] : memref<9x6x32xf32, #tpu.memory_space<vmem>>, vector<1x6x32xf32>
    %105 = vector.shape_cast %104 : vector<1x6x32xf32> to vector<6x32xf32>
    %cst_124 = arith.constant dense<0.000000e+00> : vector<6x32xf32>
    %106 = tpu.matmul %105, %76, %cst_124 {dimension_numbers = #tpu.dot_dimension_numbers<[1], [0], [0], [1], [0, 0, 1, 1], [], []>} : vector<6x32xf32>, vector<32x32xf32>, vector<6x32xf32> -> vector<6x32xf32>
    %c1_125 = arith.constant 1 : index
    %c4_126 = arith.constant 4 : index
    %c0_127 = arith.constant 0 : index
    %c0_128 = arith.constant 0 : index
    %107 = vector.load %arg3[%c1_125, %c4_126, %c0_127, %c0_128] : memref<4x9x32x6xf32, #tpu.memory_space<vmem>>, vector<1x1x32x6xf32>
    %108 = vector.shape_cast %107 : vector<1x1x32x6xf32> to vector<32x6xf32>
    %cst_129 = arith.constant dense<0.000000e+00> : vector<6x6xf32>
    %109 = tpu.matmul %106, %108, %cst_129 {dimension_numbers = #tpu.dot_dimension_numbers<[1], [0], [0], [1], [0, 0, 1, 1], [], []>} : vector<6x32xf32>, vector<32x6xf32>, vector<6x6xf32> -> vector<6x6xf32>
    %110 = arith.addf %103, %109 : vector<6x6xf32>
    %c5_130 = arith.constant 5 : index
    %c0_131 = arith.constant 0 : index
    %c0_132 = arith.constant 0 : index
    %111 = vector.load %arg2[%c5_130, %c0_131, %c0_132] : memref<9x6x32xf32, #tpu.memory_space<vmem>>, vector<1x6x32xf32>
    %112 = vector.shape_cast %111 : vector<1x6x32xf32> to vector<6x32xf32>
    %cst_133 = arith.constant dense<0.000000e+00> : vector<6x32xf32>
    %113 = tpu.matmul %112, %76, %cst_133 {dimension_numbers = #tpu.dot_dimension_numbers<[1], [0], [0], [1], [0, 0, 1, 1], [], []>} : vector<6x32xf32>, vector<32x32xf32>, vector<6x32xf32> -> vector<6x32xf32>
    %c1_134 = arith.constant 1 : index
    %c5_135 = arith.constant 5 : index
    %c0_136 = arith.constant 0 : index
    %c0_137 = arith.constant 0 : index
    %114 = vector.load %arg3[%c1_134, %c5_135, %c0_136, %c0_137] : memref<4x9x32x6xf32, #tpu.memory_space<vmem>>, vector<1x1x32x6xf32>
    %115 = vector.shape_cast %114 : vector<1x1x32x6xf32> to vector<32x6xf32>
    %cst_138 = arith.constant dense<0.000000e+00> : vector<6x6xf32>
    %116 = tpu.matmul %113, %115, %cst_138 {dimension_numbers = #tpu.dot_dimension_numbers<[1], [0], [0], [1], [0, 0, 1, 1], [], []>} : vector<6x32xf32>, vector<32x6xf32>, vector<6x6xf32> -> vector<6x6xf32>
    %117 = arith.addf %110, %116 : vector<6x6xf32>
    %c6_139 = arith.constant 6 : index
    %c0_140 = arith.constant 0 : index
    %c0_141 = arith.constant 0 : index
    %118 = vector.load %arg2[%c6_139, %c0_140, %c0_141] : memref<9x6x32xf32, #tpu.memory_space<vmem>>, vector<1x6x32xf32>
    %119 = vector.shape_cast %118 : vector<1x6x32xf32> to vector<6x32xf32>
    %cst_142 = arith.constant dense<0.000000e+00> : vector<6x32xf32>
    %120 = tpu.matmul %119, %76, %cst_142 {dimension_numbers = #tpu.dot_dimension_numbers<[1], [0], [0], [1], [0, 0, 1, 1], [], []>} : vector<6x32xf32>, vector<32x32xf32>, vector<6x32xf32> -> vector<6x32xf32>
    %c1_143 = arith.constant 1 : index
    %c6_144 = arith.constant 6 : index
    %c0_145 = arith.constant 0 : index
    %c0_146 = arith.constant 0 : index
    %121 = vector.load %arg3[%c1_143, %c6_144, %c0_145, %c0_146] : memref<4x9x32x6xf32, #tpu.memory_space<vmem>>, vector<1x1x32x6xf32>
    %122 = vector.shape_cast %121 : vector<1x1x32x6xf32> to vector<32x6xf32>
    %cst_147 = arith.constant dense<0.000000e+00> : vector<6x6xf32>
    %123 = tpu.matmul %120, %122, %cst_147 {dimension_numbers = #tpu.dot_dimension_numbers<[1], [0], [0], [1], [0, 0, 1, 1], [], []>} : vector<6x32xf32>, vector<32x6xf32>, vector<6x6xf32> -> vector<6x6xf32>
    %124 = arith.addf %117, %123 : vector<6x6xf32>
    %c7_148 = arith.constant 7 : index
    %c0_149 = arith.constant 0 : index
    %c0_150 = arith.constant 0 : index
    %125 = vector.load %arg2[%c7_148, %c0_149, %c0_150] : memref<9x6x32xf32, #tpu.memory_space<vmem>>, vector<1x6x32xf32>
    %126 = vector.shape_cast %125 : vector<1x6x32xf32> to vector<6x32xf32>
    %cst_151 = arith.constant dense<0.000000e+00> : vector<6x32xf32>
    %127 = tpu.matmul %126, %76, %cst_151 {dimension_numbers = #tpu.dot_dimension_numbers<[1], [0], [0], [1], [0, 0, 1, 1], [], []>} : vector<6x32xf32>, vector<32x32xf32>, vector<6x32xf32> -> vector<6x32xf32>
    %c1_152 = arith.constant 1 : index
    %c7_153 = arith.constant 7 : index
    %c0_154 = arith.constant 0 : index
    %c0_155 = arith.constant 0 : index
    %128 = vector.load %arg3[%c1_152, %c7_153, %c0_154, %c0_155] : memref<4x9x32x6xf32, #tpu.memory_space<vmem>>, vector<1x1x32x6xf32>
    %129 = vector.shape_cast %128 : vector<1x1x32x6xf32> to vector<32x6xf32>
    %cst_156 = arith.constant dense<0.000000e+00> : vector<6x6xf32>
    %130 = tpu.matmul %127, %129, %cst_156 {dimension_numbers = #tpu.dot_dimension_numbers<[1], [0], [0], [1], [0, 0, 1, 1], [], []>} : vector<6x32xf32>, vector<32x6xf32>, vector<6x6xf32> -> vector<6x6xf32>
    %131 = arith.addf %124, %130 : vector<6x6xf32>
    %c8_157 = arith.constant 8 : index
    %c0_158 = arith.constant 0 : index
    %c0_159 = arith.constant 0 : index
    %132 = vector.load %arg2[%c8_157, %c0_158, %c0_159] : memref<9x6x32xf32, #tpu.memory_space<vmem>>, vector<1x6x32xf32>
    %133 = vector.shape_cast %132 : vector<1x6x32xf32> to vector<6x32xf32>
    %cst_160 = arith.constant dense<0.000000e+00> : vector<6x32xf32>
    %134 = tpu.matmul %133, %76, %cst_160 {dimension_numbers = #tpu.dot_dimension_numbers<[1], [0], [0], [1], [0, 0, 1, 1], [], []>} : vector<6x32xf32>, vector<32x32xf32>, vector<6x32xf32> -> vector<6x32xf32>
    %c1_161 = arith.constant 1 : index
    %c8_162 = arith.constant 8 : index
    %c0_163 = arith.constant 0 : index
    %c0_164 = arith.constant 0 : index
    %135 = vector.load %arg3[%c1_161, %c8_162, %c0_163, %c0_164] : memref<4x9x32x6xf32, #tpu.memory_space<vmem>>, vector<1x1x32x6xf32>
    %136 = vector.shape_cast %135 : vector<1x1x32x6xf32> to vector<32x6xf32>
    %cst_165 = arith.constant dense<0.000000e+00> : vector<6x6xf32>
    %137 = tpu.matmul %134, %136, %cst_165 {dimension_numbers = #tpu.dot_dimension_numbers<[1], [0], [0], [1], [0, 0, 1, 1], [], []>} : vector<6x32xf32>, vector<32x6xf32>, vector<6x6xf32> -> vector<6x6xf32>
    %138 = arith.addf %131, %137 : vector<6x6xf32>
    %c0_166 = arith.constant 0 : index
    %c1_167 = arith.constant 1 : index
    %c0_168 = arith.constant 0 : index
    %c0_169 = arith.constant 0 : index
    %139 = vector.load %arg4[%c0_166, %c1_167, %c0_168, %c0_169] : memref<1x4x6x6xf32, #tpu.memory_space<vmem>>, vector<1x1x6x6xf32>
    %140 = vector.shape_cast %139 : vector<1x1x6x6xf32> to vector<6x6xf32>
    %141 = arith.subf %138, %140 : vector<6x6xf32>
    %142 = math.absf %141 : vector<6x6xf32>
    %143 = vector.shape_cast %142 : vector<6x6xf32> to vector<1x6x6xf32>
    %cst_170 = arith.constant dense<0.000000e+00> : vector<1xf32>
    %144 = vector.multi_reduction <add>, %143, %cst_170 [1, 2] : vector<1x6x6xf32> to vector<1xf32>
    %145 = vector.shape_cast %144 : vector<1xf32> to vector<1x1x1xf32>
    %146 = vector.extract %145[0, 0, 0] : f32 from vector<1x1x1xf32>
    %147 = vector.broadcast %146 : f32 to vector<1x1xf32>
    %148 = arith.addf %74, %147 : vector<1x1xf32>
    %c0_171 = arith.constant 0 : index
    %c2_172 = arith.constant 2 : index
    %c0_173 = arith.constant 0 : index
    %c0_174 = arith.constant 0 : index
    %149 = vector.load %arg1[%c0_171, %c2_172, %c0_173, %c0_174] : memref<1x4x32x32xf32, #tpu.memory_space<vmem>>, vector<1x1x32x32xf32>
    %150 = vector.shape_cast %149 : vector<1x1x32x32xf32> to vector<32x32xf32>
    %c0_175 = arith.constant 0 : index
    %c0_176 = arith.constant 0 : index
    %c0_177 = arith.constant 0 : index
    %151 = vector.load %arg2[%c0_175, %c0_176, %c0_177] : memref<9x6x32xf32, #tpu.memory_space<vmem>>, vector<1x6x32xf32>
    %152 = vector.shape_cast %151 : vector<1x6x32xf32> to vector<6x32xf32>
    %cst_178 = arith.constant dense<0.000000e+00> : vector<6x32xf32>
    %153 = tpu.matmul %152, %150, %cst_178 {dimension_numbers = #tpu.dot_dimension_numbers<[1], [0], [0], [1], [0, 0, 1, 1], [], []>} : vector<6x32xf32>, vector<32x32xf32>, vector<6x32xf32> -> vector<6x32xf32>
    %c2_179 = arith.constant 2 : index
    %c0_180 = arith.constant 0 : index
    %c0_181 = arith.constant 0 : index
    %c0_182 = arith.constant 0 : index
    %154 = vector.load %arg3[%c2_179, %c0_180, %c0_181, %c0_182] : memref<4x9x32x6xf32, #tpu.memory_space<vmem>>, vector<1x1x32x6xf32>
    %155 = vector.shape_cast %154 : vector<1x1x32x6xf32> to vector<32x6xf32>
    %cst_183 = arith.constant dense<0.000000e+00> : vector<6x6xf32>
    %156 = tpu.matmul %153, %155, %cst_183 {dimension_numbers = #tpu.dot_dimension_numbers<[1], [0], [0], [1], [0, 0, 1, 1], [], []>} : vector<6x32xf32>, vector<32x6xf32>, vector<6x6xf32> -> vector<6x6xf32>
    %c1_184 = arith.constant 1 : index
    %c0_185 = arith.constant 0 : index
    %c0_186 = arith.constant 0 : index
    %157 = vector.load %arg2[%c1_184, %c0_185, %c0_186] : memref<9x6x32xf32, #tpu.memory_space<vmem>>, vector<1x6x32xf32>
    %158 = vector.shape_cast %157 : vector<1x6x32xf32> to vector<6x32xf32>
    %cst_187 = arith.constant dense<0.000000e+00> : vector<6x32xf32>
    %159 = tpu.matmul %158, %150, %cst_187 {dimension_numbers = #tpu.dot_dimension_numbers<[1], [0], [0], [1], [0, 0, 1, 1], [], []>} : vector<6x32xf32>, vector<32x32xf32>, vector<6x32xf32> -> vector<6x32xf32>
    %c2_188 = arith.constant 2 : index
    %c1_189 = arith.constant 1 : index
    %c0_190 = arith.constant 0 : index
    %c0_191 = arith.constant 0 : index
    %160 = vector.load %arg3[%c2_188, %c1_189, %c0_190, %c0_191] : memref<4x9x32x6xf32, #tpu.memory_space<vmem>>, vector<1x1x32x6xf32>
    %161 = vector.shape_cast %160 : vector<1x1x32x6xf32> to vector<32x6xf32>
    %cst_192 = arith.constant dense<0.000000e+00> : vector<6x6xf32>
    %162 = tpu.matmul %159, %161, %cst_192 {dimension_numbers = #tpu.dot_dimension_numbers<[1], [0], [0], [1], [0, 0, 1, 1], [], []>} : vector<6x32xf32>, vector<32x6xf32>, vector<6x6xf32> -> vector<6x6xf32>
    %163 = arith.addf %156, %162 : vector<6x6xf32>
    %c2_193 = arith.constant 2 : index
    %c0_194 = arith.constant 0 : index
    %c0_195 = arith.constant 0 : index
    %164 = vector.load %arg2[%c2_193, %c0_194, %c0_195] : memref<9x6x32xf32, #tpu.memory_space<vmem>>, vector<1x6x32xf32>
    %165 = vector.shape_cast %164 : vector<1x6x32xf32> to vector<6x32xf32>
    %cst_196 = arith.constant dense<0.000000e+00> : vector<6x32xf32>
    %166 = tpu.matmul %165, %150, %cst_196 {dimension_numbers = #tpu.dot_dimension_numbers<[1], [0], [0], [1], [0, 0, 1, 1], [], []>} : vector<6x32xf32>, vector<32x32xf32>, vector<6x32xf32> -> vector<6x32xf32>
    %c2_197 = arith.constant 2 : index
    %c2_198 = arith.constant 2 : index
    %c0_199 = arith.constant 0 : index
    %c0_200 = arith.constant 0 : index
    %167 = vector.load %arg3[%c2_197, %c2_198, %c0_199, %c0_200] : memref<4x9x32x6xf32, #tpu.memory_space<vmem>>, vector<1x1x32x6xf32>
    %168 = vector.shape_cast %167 : vector<1x1x32x6xf32> to vector<32x6xf32>
    %cst_201 = arith.constant dense<0.000000e+00> : vector<6x6xf32>
    %169 = tpu.matmul %166, %168, %cst_201 {dimension_numbers = #tpu.dot_dimension_numbers<[1], [0], [0], [1], [0, 0, 1, 1], [], []>} : vector<6x32xf32>, vector<32x6xf32>, vector<6x6xf32> -> vector<6x6xf32>
    %170 = arith.addf %163, %169 : vector<6x6xf32>
    %c3_202 = arith.constant 3 : index
    %c0_203 = arith.constant 0 : index
    %c0_204 = arith.constant 0 : index
    %171 = vector.load %arg2[%c3_202, %c0_203, %c0_204] : memref<9x6x32xf32, #tpu.memory_space<vmem>>, vector<1x6x32xf32>
    %172 = vector.shape_cast %171 : vector<1x6x32xf32> to vector<6x32xf32>
    %cst_205 = arith.constant dense<0.000000e+00> : vector<6x32xf32>
    %173 = tpu.matmul %172, %150, %cst_205 {dimension_numbers = #tpu.dot_dimension_numbers<[1], [0], [0], [1], [0, 0, 1, 1], [], []>} : vector<6x32xf32>, vector<32x32xf32>, vector<6x32xf32> -> vector<6x32xf32>
    %c2_206 = arith.constant 2 : index
    %c3_207 = arith.constant 3 : index
    %c0_208 = arith.constant 0 : index
    %c0_209 = arith.constant 0 : index
    %174 = vector.load %arg3[%c2_206, %c3_207, %c0_208, %c0_209] : memref<4x9x32x6xf32, #tpu.memory_space<vmem>>, vector<1x1x32x6xf32>
    %175 = vector.shape_cast %174 : vector<1x1x32x6xf32> to vector<32x6xf32>
    %cst_210 = arith.constant dense<0.000000e+00> : vector<6x6xf32>
    %176 = tpu.matmul %173, %175, %cst_210 {dimension_numbers = #tpu.dot_dimension_numbers<[1], [0], [0], [1], [0, 0, 1, 1], [], []>} : vector<6x32xf32>, vector<32x6xf32>, vector<6x6xf32> -> vector<6x6xf32>
    %177 = arith.addf %170, %176 : vector<6x6xf32>
    %c4_211 = arith.constant 4 : index
    %c0_212 = arith.constant 0 : index
    %c0_213 = arith.constant 0 : index
    %178 = vector.load %arg2[%c4_211, %c0_212, %c0_213] : memref<9x6x32xf32, #tpu.memory_space<vmem>>, vector<1x6x32xf32>
    %179 = vector.shape_cast %178 : vector<1x6x32xf32> to vector<6x32xf32>
    %cst_214 = arith.constant dense<0.000000e+00> : vector<6x32xf32>
    %180 = tpu.matmul %179, %150, %cst_214 {dimension_numbers = #tpu.dot_dimension_numbers<[1], [0], [0], [1], [0, 0, 1, 1], [], []>} : vector<6x32xf32>, vector<32x32xf32>, vector<6x32xf32> -> vector<6x32xf32>
    %c2_215 = arith.constant 2 : index
    %c4_216 = arith.constant 4 : index
    %c0_217 = arith.constant 0 : index
    %c0_218 = arith.constant 0 : index
    %181 = vector.load %arg3[%c2_215, %c4_216, %c0_217, %c0_218] : memref<4x9x32x6xf32, #tpu.memory_space<vmem>>, vector<1x1x32x6xf32>
    %182 = vector.shape_cast %181 : vector<1x1x32x6xf32> to vector<32x6xf32>
    %cst_219 = arith.constant dense<0.000000e+00> : vector<6x6xf32>
    %183 = tpu.matmul %180, %182, %cst_219 {dimension_numbers = #tpu.dot_dimension_numbers<[1], [0], [0], [1], [0, 0, 1, 1], [], []>} : vector<6x32xf32>, vector<32x6xf32>, vector<6x6xf32> -> vector<6x6xf32>
    %184 = arith.addf %177, %183 : vector<6x6xf32>
    %c5_220 = arith.constant 5 : index
    %c0_221 = arith.constant 0 : index
    %c0_222 = arith.constant 0 : index
    %185 = vector.load %arg2[%c5_220, %c0_221, %c0_222] : memref<9x6x32xf32, #tpu.memory_space<vmem>>, vector<1x6x32xf32>
    %186 = vector.shape_cast %185 : vector<1x6x32xf32> to vector<6x32xf32>
    %cst_223 = arith.constant dense<0.000000e+00> : vector<6x32xf32>
    %187 = tpu.matmul %186, %150, %cst_223 {dimension_numbers = #tpu.dot_dimension_numbers<[1], [0], [0], [1], [0, 0, 1, 1], [], []>} : vector<6x32xf32>, vector<32x32xf32>, vector<6x32xf32> -> vector<6x32xf32>
    %c2_224 = arith.constant 2 : index
    %c5_225 = arith.constant 5 : index
    %c0_226 = arith.constant 0 : index
    %c0_227 = arith.constant 0 : index
    %188 = vector.load %arg3[%c2_224, %c5_225, %c0_226, %c0_227] : memref<4x9x32x6xf32, #tpu.memory_space<vmem>>, vector<1x1x32x6xf32>
    %189 = vector.shape_cast %188 : vector<1x1x32x6xf32> to vector<32x6xf32>
    %cst_228 = arith.constant dense<0.000000e+00> : vector<6x6xf32>
    %190 = tpu.matmul %187, %189, %cst_228 {dimension_numbers = #tpu.dot_dimension_numbers<[1], [0], [0], [1], [0, 0, 1, 1], [], []>} : vector<6x32xf32>, vector<32x6xf32>, vector<6x6xf32> -> vector<6x6xf32>
    %191 = arith.addf %184, %190 : vector<6x6xf32>
    %c6_229 = arith.constant 6 : index
    %c0_230 = arith.constant 0 : index
    %c0_231 = arith.constant 0 : index
    %192 = vector.load %arg2[%c6_229, %c0_230, %c0_231] : memref<9x6x32xf32, #tpu.memory_space<vmem>>, vector<1x6x32xf32>
    %193 = vector.shape_cast %192 : vector<1x6x32xf32> to vector<6x32xf32>
    %cst_232 = arith.constant dense<0.000000e+00> : vector<6x32xf32>
    %194 = tpu.matmul %193, %150, %cst_232 {dimension_numbers = #tpu.dot_dimension_numbers<[1], [0], [0], [1], [0, 0, 1, 1], [], []>} : vector<6x32xf32>, vector<32x32xf32>, vector<6x32xf32> -> vector<6x32xf32>
    %c2_233 = arith.constant 2 : index
    %c6_234 = arith.constant 6 : index
    %c0_235 = arith.constant 0 : index
    %c0_236 = arith.constant 0 : index
    %195 = vector.load %arg3[%c2_233, %c6_234, %c0_235, %c0_236] : memref<4x9x32x6xf32, #tpu.memory_space<vmem>>, vector<1x1x32x6xf32>
    %196 = vector.shape_cast %195 : vector<1x1x32x6xf32> to vector<32x6xf32>
    %cst_237 = arith.constant dense<0.000000e+00> : vector<6x6xf32>
    %197 = tpu.matmul %194, %196, %cst_237 {dimension_numbers = #tpu.dot_dimension_numbers<[1], [0], [0], [1], [0, 0, 1, 1], [], []>} : vector<6x32xf32>, vector<32x6xf32>, vector<6x6xf32> -> vector<6x6xf32>
    %198 = arith.addf %191, %197 : vector<6x6xf32>
    %c7_238 = arith.constant 7 : index
    %c0_239 = arith.constant 0 : index
    %c0_240 = arith.constant 0 : index
    %199 = vector.load %arg2[%c7_238, %c0_239, %c0_240] : memref<9x6x32xf32, #tpu.memory_space<vmem>>, vector<1x6x32xf32>
    %200 = vector.shape_cast %199 : vector<1x6x32xf32> to vector<6x32xf32>
    %cst_241 = arith.constant dense<0.000000e+00> : vector<6x32xf32>
    %201 = tpu.matmul %200, %150, %cst_241 {dimension_numbers = #tpu.dot_dimension_numbers<[1], [0], [0], [1], [0, 0, 1, 1], [], []>} : vector<6x32xf32>, vector<32x32xf32>, vector<6x32xf32> -> vector<6x32xf32>
    %c2_242 = arith.constant 2 : index
    %c7_243 = arith.constant 7 : index
    %c0_244 = arith.constant 0 : index
    %c0_245 = arith.constant 0 : index
    %202 = vector.load %arg3[%c2_242, %c7_243, %c0_244, %c0_245] : memref<4x9x32x6xf32, #tpu.memory_space<vmem>>, vector<1x1x32x6xf32>
    %203 = vector.shape_cast %202 : vector<1x1x32x6xf32> to vector<32x6xf32>
    %cst_246 = arith.constant dense<0.000000e+00> : vector<6x6xf32>
    %204 = tpu.matmul %201, %203, %cst_246 {dimension_numbers = #tpu.dot_dimension_numbers<[1], [0], [0], [1], [0, 0, 1, 1], [], []>} : vector<6x32xf32>, vector<32x6xf32>, vector<6x6xf32> -> vector<6x6xf32>
    %205 = arith.addf %198, %204 : vector<6x6xf32>
    %c8_247 = arith.constant 8 : index
    %c0_248 = arith.constant 0 : index
    %c0_249 = arith.constant 0 : index
    %206 = vector.load %arg2[%c8_247, %c0_248, %c0_249] : memref<9x6x32xf32, #tpu.memory_space<vmem>>, vector<1x6x32xf32>
    %207 = vector.shape_cast %206 : vector<1x6x32xf32> to vector<6x32xf32>
    %cst_250 = arith.constant dense<0.000000e+00> : vector<6x32xf32>
    %208 = tpu.matmul %207, %150, %cst_250 {dimension_numbers = #tpu.dot_dimension_numbers<[1], [0], [0], [1], [0, 0, 1, 1], [], []>} : vector<6x32xf32>, vector<32x32xf32>, vector<6x32xf32> -> vector<6x32xf32>
    %c2_251 = arith.constant 2 : index
    %c8_252 = arith.constant 8 : index
    %c0_253 = arith.constant 0 : index
    %c0_254 = arith.constant 0 : index
    %209 = vector.load %arg3[%c2_251, %c8_252, %c0_253, %c0_254] : memref<4x9x32x6xf32, #tpu.memory_space<vmem>>, vector<1x1x32x6xf32>
    %210 = vector.shape_cast %209 : vector<1x1x32x6xf32> to vector<32x6xf32>
    %cst_255 = arith.constant dense<0.000000e+00> : vector<6x6xf32>
    %211 = tpu.matmul %208, %210, %cst_255 {dimension_numbers = #tpu.dot_dimension_numbers<[1], [0], [0], [1], [0, 0, 1, 1], [], []>} : vector<6x32xf32>, vector<32x6xf32>, vector<6x6xf32> -> vector<6x6xf32>
    %212 = arith.addf %205, %211 : vector<6x6xf32>
    %c0_256 = arith.constant 0 : index
    %c2_257 = arith.constant 2 : index
    %c0_258 = arith.constant 0 : index
    %c0_259 = arith.constant 0 : index
    %213 = vector.load %arg4[%c0_256, %c2_257, %c0_258, %c0_259] : memref<1x4x6x6xf32, #tpu.memory_space<vmem>>, vector<1x1x6x6xf32>
    %214 = vector.shape_cast %213 : vector<1x1x6x6xf32> to vector<6x6xf32>
    %215 = arith.subf %212, %214 : vector<6x6xf32>
    %216 = math.absf %215 : vector<6x6xf32>
    %217 = vector.shape_cast %216 : vector<6x6xf32> to vector<1x6x6xf32>
    %cst_260 = arith.constant dense<0.000000e+00> : vector<1xf32>
    %218 = vector.multi_reduction <add>, %217, %cst_260 [1, 2] : vector<1x6x6xf32> to vector<1xf32>
    %219 = vector.shape_cast %218 : vector<1xf32> to vector<1x1x1xf32>
    %220 = vector.extract %219[0, 0, 0] : f32 from vector<1x1x1xf32>
    %221 = vector.broadcast %220 : f32 to vector<1x1xf32>
    %222 = arith.addf %148, %221 : vector<1x1xf32>
    %c0_261 = arith.constant 0 : index
    %c3_262 = arith.constant 3 : index
    %c0_263 = arith.constant 0 : index
    %c0_264 = arith.constant 0 : index
    %223 = vector.load %arg1[%c0_261, %c3_262, %c0_263, %c0_264] : memref<1x4x32x32xf32, #tpu.memory_space<vmem>>, vector<1x1x32x32xf32>
    %224 = vector.shape_cast %223 : vector<1x1x32x32xf32> to vector<32x32xf32>
    %c0_265 = arith.constant 0 : index
    %c0_266 = arith.constant 0 : index
    %c0_267 = arith.constant 0 : index
    %225 = vector.load %arg2[%c0_265, %c0_266, %c0_267] : memref<9x6x32xf32, #tpu.memory_space<vmem>>, vector<1x6x32xf32>
    %226 = vector.shape_cast %225 : vector<1x6x32xf32> to vector<6x32xf32>
    %cst_268 = arith.constant dense<0.000000e+00> : vector<6x32xf32>
    %227 = tpu.matmul %226, %224, %cst_268 {dimension_numbers = #tpu.dot_dimension_numbers<[1], [0], [0], [1], [0, 0, 1, 1], [], []>} : vector<6x32xf32>, vector<32x32xf32>, vector<6x32xf32> -> vector<6x32xf32>
    %c3_269 = arith.constant 3 : index
    %c0_270 = arith.constant 0 : index
    %c0_271 = arith.constant 0 : index
    %c0_272 = arith.constant 0 : index
    %228 = vector.load %arg3[%c3_269, %c0_270, %c0_271, %c0_272] : memref<4x9x32x6xf32, #tpu.memory_space<vmem>>, vector<1x1x32x6xf32>
    %229 = vector.shape_cast %228 : vector<1x1x32x6xf32> to vector<32x6xf32>
    %cst_273 = arith.constant dense<0.000000e+00> : vector<6x6xf32>
    %230 = tpu.matmul %227, %229, %cst_273 {dimension_numbers = #tpu.dot_dimension_numbers<[1], [0], [0], [1], [0, 0, 1, 1], [], []>} : vector<6x32xf32>, vector<32x6xf32>, vector<6x6xf32> -> vector<6x6xf32>
    %c1_274 = arith.constant 1 : index
    %c0_275 = arith.constant 0 : index
    %c0_276 = arith.constant 0 : index
    %231 = vector.load %arg2[%c1_274, %c0_275, %c0_276] : memref<9x6x32xf32, #tpu.memory_space<vmem>>, vector<1x6x32xf32>
    %232 = vector.shape_cast %231 : vector<1x6x32xf32> to vector<6x32xf32>
    %cst_277 = arith.constant dense<0.000000e+00> : vector<6x32xf32>
    %233 = tpu.matmul %232, %224, %cst_277 {dimension_numbers = #tpu.dot_dimension_numbers<[1], [0], [0], [1], [0, 0, 1, 1], [], []>} : vector<6x32xf32>, vector<32x32xf32>, vector<6x32xf32> -> vector<6x32xf32>
    %c3_278 = arith.constant 3 : index
    %c1_279 = arith.constant 1 : index
    %c0_280 = arith.constant 0 : index
    %c0_281 = arith.constant 0 : index
    %234 = vector.load %arg3[%c3_278, %c1_279, %c0_280, %c0_281] : memref<4x9x32x6xf32, #tpu.memory_space<vmem>>, vector<1x1x32x6xf32>
    %235 = vector.shape_cast %234 : vector<1x1x32x6xf32> to vector<32x6xf32>
    %cst_282 = arith.constant dense<0.000000e+00> : vector<6x6xf32>
    %236 = tpu.matmul %233, %235, %cst_282 {dimension_numbers = #tpu.dot_dimension_numbers<[1], [0], [0], [1], [0, 0, 1, 1], [], []>} : vector<6x32xf32>, vector<32x6xf32>, vector<6x6xf32> -> vector<6x6xf32>
    %237 = arith.addf %230, %236 : vector<6x6xf32>
    %c2_283 = arith.constant 2 : index
    %c0_284 = arith.constant 0 : index
    %c0_285 = arith.constant 0 : index
    %238 = vector.load %arg2[%c2_283, %c0_284, %c0_285] : memref<9x6x32xf32, #tpu.memory_space<vmem>>, vector<1x6x32xf32>
    %239 = vector.shape_cast %238 : vector<1x6x32xf32> to vector<6x32xf32>
    %cst_286 = arith.constant dense<0.000000e+00> : vector<6x32xf32>
    %240 = tpu.matmul %239, %224, %cst_286 {dimension_numbers = #tpu.dot_dimension_numbers<[1], [0], [0], [1], [0, 0, 1, 1], [], []>} : vector<6x32xf32>, vector<32x32xf32>, vector<6x32xf32> -> vector<6x32xf32>
    %c3_287 = arith.constant 3 : index
    %c2_288 = arith.constant 2 : index
    %c0_289 = arith.constant 0 : index
    %c0_290 = arith.constant 0 : index
    %241 = vector.load %arg3[%c3_287, %c2_288, %c0_289, %c0_290] : memref<4x9x32x6xf32, #tpu.memory_space<vmem>>, vector<1x1x32x6xf32>
    %242 = vector.shape_cast %241 : vector<1x1x32x6xf32> to vector<32x6xf32>
    %cst_291 = arith.constant dense<0.000000e+00> : vector<6x6xf32>
    %243 = tpu.matmul %240, %242, %cst_291 {dimension_numbers = #tpu.dot_dimension_numbers<[1], [0], [0], [1], [0, 0, 1, 1], [], []>} : vector<6x32xf32>, vector<32x6xf32>, vector<6x6xf32> -> vector<6x6xf32>
    %244 = arith.addf %237, %243 : vector<6x6xf32>
    %c3_292 = arith.constant 3 : index
    %c0_293 = arith.constant 0 : index
    %c0_294 = arith.constant 0 : index
    %245 = vector.load %arg2[%c3_292, %c0_293, %c0_294] : memref<9x6x32xf32, #tpu.memory_space<vmem>>, vector<1x6x32xf32>
    %246 = vector.shape_cast %245 : vector<1x6x32xf32> to vector<6x32xf32>
    %cst_295 = arith.constant dense<0.000000e+00> : vector<6x32xf32>
    %247 = tpu.matmul %246, %224, %cst_295 {dimension_numbers = #tpu.dot_dimension_numbers<[1], [0], [0], [1], [0, 0, 1, 1], [], []>} : vector<6x32xf32>, vector<32x32xf32>, vector<6x32xf32> -> vector<6x32xf32>
    %c3_296 = arith.constant 3 : index
    %c3_297 = arith.constant 3 : index
    %c0_298 = arith.constant 0 : index
    %c0_299 = arith.constant 0 : index
    %248 = vector.load %arg3[%c3_296, %c3_297, %c0_298, %c0_299] : memref<4x9x32x6xf32, #tpu.memory_space<vmem>>, vector<1x1x32x6xf32>
    %249 = vector.shape_cast %248 : vector<1x1x32x6xf32> to vector<32x6xf32>
    %cst_300 = arith.constant dense<0.000000e+00> : vector<6x6xf32>
    %250 = tpu.matmul %247, %249, %cst_300 {dimension_numbers = #tpu.dot_dimension_numbers<[1], [0], [0], [1], [0, 0, 1, 1], [], []>} : vector<6x32xf32>, vector<32x6xf32>, vector<6x6xf32> -> vector<6x6xf32>
    %251 = arith.addf %244, %250 : vector<6x6xf32>
    %c4_301 = arith.constant 4 : index
    %c0_302 = arith.constant 0 : index
    %c0_303 = arith.constant 0 : index
    %252 = vector.load %arg2[%c4_301, %c0_302, %c0_303] : memref<9x6x32xf32, #tpu.memory_space<vmem>>, vector<1x6x32xf32>
    %253 = vector.shape_cast %252 : vector<1x6x32xf32> to vector<6x32xf32>
    %cst_304 = arith.constant dense<0.000000e+00> : vector<6x32xf32>
    %254 = tpu.matmul %253, %224, %cst_304 {dimension_numbers = #tpu.dot_dimension_numbers<[1], [0], [0], [1], [0, 0, 1, 1], [], []>} : vector<6x32xf32>, vector<32x32xf32>, vector<6x32xf32> -> vector<6x32xf32>
    %c3_305 = arith.constant 3 : index
    %c4_306 = arith.constant 4 : index
    %c0_307 = arith.constant 0 : index
    %c0_308 = arith.constant 0 : index
    %255 = vector.load %arg3[%c3_305, %c4_306, %c0_307, %c0_308] : memref<4x9x32x6xf32, #tpu.memory_space<vmem>>, vector<1x1x32x6xf32>
    %256 = vector.shape_cast %255 : vector<1x1x32x6xf32> to vector<32x6xf32>
    %cst_309 = arith.constant dense<0.000000e+00> : vector<6x6xf32>
    %257 = tpu.matmul %254, %256, %cst_309 {dimension_numbers = #tpu.dot_dimension_numbers<[1], [0], [0], [1], [0, 0, 1, 1], [], []>} : vector<6x32xf32>, vector<32x6xf32>, vector<6x6xf32> -> vector<6x6xf32>
    %258 = arith.addf %251, %257 : vector<6x6xf32>
    %c5_310 = arith.constant 5 : index
    %c0_311 = arith.constant 0 : index
    %c0_312 = arith.constant 0 : index
    %259 = vector.load %arg2[%c5_310, %c0_311, %c0_312] : memref<9x6x32xf32, #tpu.memory_space<vmem>>, vector<1x6x32xf32>
    %260 = vector.shape_cast %259 : vector<1x6x32xf32> to vector<6x32xf32>
    %cst_313 = arith.constant dense<0.000000e+00> : vector<6x32xf32>
    %261 = tpu.matmul %260, %224, %cst_313 {dimension_numbers = #tpu.dot_dimension_numbers<[1], [0], [0], [1], [0, 0, 1, 1], [], []>} : vector<6x32xf32>, vector<32x32xf32>, vector<6x32xf32> -> vector<6x32xf32>
    %c3_314 = arith.constant 3 : index
    %c5_315 = arith.constant 5 : index
    %c0_316 = arith.constant 0 : index
    %c0_317 = arith.constant 0 : index
    %262 = vector.load %arg3[%c3_314, %c5_315, %c0_316, %c0_317] : memref<4x9x32x6xf32, #tpu.memory_space<vmem>>, vector<1x1x32x6xf32>
    %263 = vector.shape_cast %262 : vector<1x1x32x6xf32> to vector<32x6xf32>
    %cst_318 = arith.constant dense<0.000000e+00> : vector<6x6xf32>
    %264 = tpu.matmul %261, %263, %cst_318 {dimension_numbers = #tpu.dot_dimension_numbers<[1], [0], [0], [1], [0, 0, 1, 1], [], []>} : vector<6x32xf32>, vector<32x6xf32>, vector<6x6xf32> -> vector<6x6xf32>
    %265 = arith.addf %258, %264 : vector<6x6xf32>
    %c6_319 = arith.constant 6 : index
    %c0_320 = arith.constant 0 : index
    %c0_321 = arith.constant 0 : index
    %266 = vector.load %arg2[%c6_319, %c0_320, %c0_321] : memref<9x6x32xf32, #tpu.memory_space<vmem>>, vector<1x6x32xf32>
    %267 = vector.shape_cast %266 : vector<1x6x32xf32> to vector<6x32xf32>
    %cst_322 = arith.constant dense<0.000000e+00> : vector<6x32xf32>
    %268 = tpu.matmul %267, %224, %cst_322 {dimension_numbers = #tpu.dot_dimension_numbers<[1], [0], [0], [1], [0, 0, 1, 1], [], []>} : vector<6x32xf32>, vector<32x32xf32>, vector<6x32xf32> -> vector<6x32xf32>
    %c3_323 = arith.constant 3 : index
    %c6_324 = arith.constant 6 : index
    %c0_325 = arith.constant 0 : index
    %c0_326 = arith.constant 0 : index
    %269 = vector.load %arg3[%c3_323, %c6_324, %c0_325, %c0_326] : memref<4x9x32x6xf32, #tpu.memory_space<vmem>>, vector<1x1x32x6xf32>
    %270 = vector.shape_cast %269 : vector<1x1x32x6xf32> to vector<32x6xf32>
    %cst_327 = arith.constant dense<0.000000e+00> : vector<6x6xf32>
    %271 = tpu.matmul %268, %270, %cst_327 {dimension_numbers = #tpu.dot_dimension_numbers<[1], [0], [0], [1], [0, 0, 1, 1], [], []>} : vector<6x32xf32>, vector<32x6xf32>, vector<6x6xf32> -> vector<6x6xf32>
    %272 = arith.addf %265, %271 : vector<6x6xf32>
    %c7_328 = arith.constant 7 : index
    %c0_329 = arith.constant 0 : index
    %c0_330 = arith.constant 0 : index
    %273 = vector.load %arg2[%c7_328, %c0_329, %c0_330] : memref<9x6x32xf32, #tpu.memory_space<vmem>>, vector<1x6x32xf32>
    %274 = vector.shape_cast %273 : vector<1x6x32xf32> to vector<6x32xf32>
    %cst_331 = arith.constant dense<0.000000e+00> : vector<6x32xf32>
    %275 = tpu.matmul %274, %224, %cst_331 {dimension_numbers = #tpu.dot_dimension_numbers<[1], [0], [0], [1], [0, 0, 1, 1], [], []>} : vector<6x32xf32>, vector<32x32xf32>, vector<6x32xf32> -> vector<6x32xf32>
    %c3_332 = arith.constant 3 : index
    %c7_333 = arith.constant 7 : index
    %c0_334 = arith.constant 0 : index
    %c0_335 = arith.constant 0 : index
    %276 = vector.load %arg3[%c3_332, %c7_333, %c0_334, %c0_335] : memref<4x9x32x6xf32, #tpu.memory_space<vmem>>, vector<1x1x32x6xf32>
    %277 = vector.shape_cast %276 : vector<1x1x32x6xf32> to vector<32x6xf32>
    %cst_336 = arith.constant dense<0.000000e+00> : vector<6x6xf32>
    %278 = tpu.matmul %275, %277, %cst_336 {dimension_numbers = #tpu.dot_dimension_numbers<[1], [0], [0], [1], [0, 0, 1, 1], [], []>} : vector<6x32xf32>, vector<32x6xf32>, vector<6x6xf32> -> vector<6x6xf32>
    %279 = arith.addf %272, %278 : vector<6x6xf32>
    %c8_337 = arith.constant 8 : index
    %c0_338 = arith.constant 0 : index
    %c0_339 = arith.constant 0 : index
    %280 = vector.load %arg2[%c8_337, %c0_338, %c0_339] : memref<9x6x32xf32, #tpu.memory_space<vmem>>, vector<1x6x32xf32>
    %281 = vector.shape_cast %280 : vector<1x6x32xf32> to vector<6x32xf32>
    %cst_340 = arith.constant dense<0.000000e+00> : vector<6x32xf32>
    %282 = tpu.matmul %281, %224, %cst_340 {dimension_numbers = #tpu.dot_dimension_numbers<[1], [0], [0], [1], [0, 0, 1, 1], [], []>} : vector<6x32xf32>, vector<32x32xf32>, vector<6x32xf32> -> vector<6x32xf32>
    %c3_341 = arith.constant 3 : index
    %c8_342 = arith.constant 8 : index
    %c0_343 = arith.constant 0 : index
    %c0_344 = arith.constant 0 : index
    %283 = vector.load %arg3[%c3_341, %c8_342, %c0_343, %c0_344] : memref<4x9x32x6xf32, #tpu.memory_space<vmem>>, vector<1x1x32x6xf32>
    %284 = vector.shape_cast %283 : vector<1x1x32x6xf32> to vector<32x6xf32>
    %cst_345 = arith.constant dense<0.000000e+00> : vector<6x6xf32>
    %285 = tpu.matmul %282, %284, %cst_345 {dimension_numbers = #tpu.dot_dimension_numbers<[1], [0], [0], [1], [0, 0, 1, 1], [], []>} : vector<6x32xf32>, vector<32x6xf32>, vector<6x6xf32> -> vector<6x6xf32>
    %286 = arith.addf %279, %285 : vector<6x6xf32>
    %c0_346 = arith.constant 0 : index
    %c3_347 = arith.constant 3 : index
    %c0_348 = arith.constant 0 : index
    %c0_349 = arith.constant 0 : index
    %287 = vector.load %arg4[%c0_346, %c3_347, %c0_348, %c0_349] : memref<1x4x6x6xf32, #tpu.memory_space<vmem>>, vector<1x1x6x6xf32>
    %288 = vector.shape_cast %287 : vector<1x1x6x6xf32> to vector<6x6xf32>
    %289 = arith.subf %286, %288 : vector<6x6xf32>
    %290 = math.absf %289 : vector<6x6xf32>
    %291 = vector.shape_cast %290 : vector<6x6xf32> to vector<1x6x6xf32>
    %cst_350 = arith.constant dense<0.000000e+00> : vector<1xf32>
    %292 = vector.multi_reduction <add>, %291, %cst_350 [1, 2] : vector<1x6x6xf32> to vector<1xf32>
    %293 = vector.shape_cast %292 : vector<1xf32> to vector<1x1x1xf32>
    %294 = vector.extract %293[0, 0, 0] : f32 from vector<1x1x1xf32>
    %295 = vector.broadcast %294 : f32 to vector<1x1xf32>
    %296 = arith.addf %222, %295 : vector<1x1xf32>
    %297 = vector.shape_cast %296 : vector<1x1xf32> to vector<1x1x1xf32>
    %298 = vector.broadcast %297 : vector<1x1x1xf32> to vector<1x8x128xf32>
    %c0_351 = arith.constant 0 : index
    %c0_352 = arith.constant 0 : index
    %c0_353 = arith.constant 0 : index
    %299 = vector.load %arg5[%c0_351, %c0_352, %c0_353] : memref<1x8x128xf32, #tpu.memory_space<vmem>>, vector<1x8x128xf32>
    tpu.vector_store %arg5[%c0_351, %c0_352, %c0_353], %298 {strides = array<i32>} : memref<1x8x128xf32, #tpu.memory_space<vmem>>, vector<1x8x128xf32>,
    return
  }
  func.func @transform_0(%arg0: i32) -> (i32, i32, i32, i32) {
    %c0_i32 = arith.constant 0 : i32
    %c0_i32_0 = arith.constant 0 : i32
    %c0_i32_1 = arith.constant 0 : i32
    %c0_i32_2 = arith.constant 0 : i32
    return %arg0, %c0_i32, %c0_i32_0, %c0_i32_1 : i32, i32, i32, i32
  }
  func.func @transform_1(%arg0: i32) -> (i32, i32, i32) {
    %c0_i32 = arith.constant 0 : i32
    %c0_i32_0 = arith.constant 0 : i32
    %c0_i32_1 = arith.constant 0 : i32
    %c0_i32_2 = arith.constant 0 : i32
    return %c0_i32, %c0_i32_0, %c0_i32_1 : i32, i32, i32
  }
  func.func @transform_2(%arg0: i32) -> (i32, i32, i32, i32) {
    %c0_i32 = arith.constant 0 : i32
    %c0_i32_0 = arith.constant 0 : i32
    %c0_i32_1 = arith.constant 0 : i32
    %c0_i32_2 = arith.constant 0 : i32
    %c0_i32_3 = arith.constant 0 : i32
    return %c0_i32, %c0_i32_0, %c0_i32_1, %c0_i32_2 : i32, i32, i32, i32
  }
  func.func @transform_3(%arg0: i32) -> (i32, i32, i32, i32) {
    %c0_i32 = arith.constant 0 : i32
    %c0_i32_0 = arith.constant 0 : i32
    %c0_i32_1 = arith.constant 0 : i32
    %c0_i32_2 = arith.constant 0 : i32
    return %arg0, %c0_i32, %c0_i32_0, %c0_i32_1 : i32, i32, i32, i32
  }
  func.func @transform_4(%arg0: i32) -> (i32, i32, i32) {
    %c0_i32 = arith.constant 0 : i32
    %c0_i32_0 = arith.constant 0 : i32
    %c0_i32_1 = arith.constant 0 : i32
    return %arg0, %c0_i32, %c0_i32_0 : i32, i32, i32
  }
}

</mosaic_0001>

<bundles_post_ra>
// kernel: tpu_custom_call.1
= control target key start
LH: loop header
LB: loop body
LE: loop exit
PB: predicated region body
PF: predicated region fallthrough
CT: control target
= control target key end

     0   :  { %9 = vsyncpa [#allocation3], 0  ;;  %s3463_s0 = inlined_call_operand.vmem [shape: f32[2,4,32,32], index: 0, kind: input, shape index: {}]   ;;  %s3464_s1 = inlined_call_operand.vmem [shape: f32[9,6,32], index: 1, kind: input, shape index: {}]   ;;  %s3465_s2 = inlined_call_operand.vmem [shape: f32[4,9,32,6], index: 2, kind: input, shape index: {}]   ;;  %s3466_s3 = inlined_call_operand.vmem [shape: f32[2,4,6,6], index: 3, kind: input, shape index: {}]   ;;  %s3467_s4 = inlined_call_operand.hbm [shape: f32[2,8,128], index: 4, kind: output, shape index: {}]  }
   0x1   :  { %11 = vsyncpa [#allocation3 + $0x1], 0  ;;  %s2573_s15 = smov 0   ;;  %s2575_s16 = smov 0  }
   0x2   :  { %s2577_s17 = smov 0   ;;  %s2579_s18 = smov 0  }
   0x3 LB: > { %s2594_s19 = sadd.s32 4294967295, %s2546_s18   ;;  %s2187_s20 = sadd.s32 4294967294, %s2546_s18   ;;  %s2546_s18 = sphi %s2579_s18, %s3473_s18   ;;  %s2542_s17 = sphi %s2577_s17, %s3472_s17   ;;  %s2538_s16 = sphi %s2575_s16, %s3471_s16   ;;  %s2534_s15 = sphi %s2573_s15, %s3470_s15  }
   0x4   : > { %s2598_s21 = sadd.s32 1, %s2546_s18   ;;  %s118_s22 = sadd.s32 1, %s2542_s17 }
   0x5   : > { %s115_s23 = ssub.s32 %s2546_s18, %s2598_s21  ;;  %p128_p0 = scmp.ne.s32.totalorder %s2542_s17, %s2538_s16 }
   0x6   : > { %p116_p1 = scmp.eq.s32.totalorder %s115_s23, 0  ;;  %p129_p2 = scmp.eq.s32.totalorder %s2594_s19, 1 }
   0x7   : > { %p134_p3 = scmp.ne.s32.totalorder %s2538_s16, %s2534_s15  ;;  %p135_p4 = scmp.eq.s32.totalorder %s2187_s20, 1 }
   0x8   : > { %s2609_s24 = scalar_select %p116_p1, %s2542_s17, %s118_s22  }
   0x9   : > { %p2611_p5 = por %p129_p2, %p128_p0  ;;  %p2615_p6 = por %p135_p4, %p134_p3 }
   0xa   : > { %p2190_p7 = scmp.ge.s32.totalorder %s2546_s18, 1  ;;  %p175_p8 = scmp.lt.s32.totalorder %s2546_s18, 3 }
   0xc   : > { %p176_p9 = pnand %p2190_p7, %p175_p8 }
   0xd   : > { %p206_p10 = scmp.lt.s32.totalorder (!%p176_p9), %s2594_s19, 1  ;;  %s203_s8 = sand.u32 (!%p176_p9), 1, %s2538_s16  }
   0xe   : > { %179 = sbr.rel (%p176_p9) target bundleno = 1503 (0x5df), region = 36  ;;  %s2191_s11 = sshll.u32 (!%p176_p9), %s203_s8, 3 }
  0x13   : > { %v2202_v0 = vld [vmem:[%s3465_s2 + $0x38] sm:$0xff]  ;;  %s2629_s5 = scalar_select %p206_p10, %s2594_s19, 1  ;;  %v2201_v2 = vld [vmem:[%s3465_s2 + $0x30] sm:$0xff]  ;;  %v2200_v4 = vld [vmem:[%s3465_s2 + $0x28] sm:$0xff]  ;;  %vm221_vm0 = vcmask 261120   ;;  %vm706_vm1 = vcmask 46080  }
  0x14   : > { %v248_v1 = vld [vmem:[%s3465_s2 + $0x18] sm:$0xff]  ;;  %294 = vmatpush.msra.mxu2 %v2202_v0  ;;  %v247_v3 = vld [vmem:[%s3465_s2 + $0x10] sm:$0xff]  ;;  %v246_v5 = vld [vmem:[%s3465_s2 + $0x8] sm:$0xff] }
  0x15   : > { %317 = vmatpush.msra.mxu3 %v248_v1  ;;  %s2435_s14 = sshll.u32 %s2629_s5, 7  ;;  %v2670_v10 = vld [vmem:[%s3464_s1] sm:$0x3f]  ;;  %v2675_v11 = vld [vmem:[%s3464_s1 + $0x8] sm:$0x3f]  ;;  %v2210_v15 = vld [vmem:[%s3465_s2 + $0x58] sm:$0xff] }
  0x16   : > { %295 = vmatpush.msra.mxu2 %v2201_v2  ;;  %s2647_s23 = scalar_lea.vmem %s3463_s0, %s2435_s14  ;;  %v2689_v12 = vld [vmem:[%s3464_s1 + $0x10] sm:$0x3f]  ;;  %v2199_v13 = vld [vmem:[%s3465_s2 + $0x20] sm:$0xff]  ;;  %v2208_v17 = vld [vmem:[%s3465_s2 + $0x48] sm:$0xff]  ;;  %s2436_s14 = sshll.u32 %s2629_s5, 5 }
  0x17   : > { %318 = vmatpush.msra.mxu3 %v247_v3  ;;  %v2650_v6 = vld [vmem:[%s2647_s23 + $0x18] sm:$0xff]  ;;  %v2653_v7 = vld [vmem:[%s2647_s23 + $0x10] sm:$0xff]  ;;  %v2658_v8 = vld [vmem:[%s2647_s23 + $0x8] sm:$0xff]  ;;  %s2956_s27 = scalar_lea.vmem %s3466_s3, %s2436_s14 }
  0x18   : > { %296 = vmatpush.msra.mxu2 %v2200_v4  ;;  %237 = vmatpush.msra.mxu0 %v2650_v6  ;;  %v2663_v9 = vld [vmem:[%s2647_s23] sm:$0xff]  ;;  %v2209_v16 = vld [vmem:[%s3465_s2 + $0x50] sm:$0xff]  ;;  %v2756_v24 = vld [vmem:[%s3464_s1 + $0x18] sm:$0x3f] }
  0x19   : > { %319 = vmatpush.msra.mxu3 %v246_v5  ;;  %266 = vmatpush.msra.mxu1 %v2650_v6  ;;  %v245_v14 = vld [vmem:[%s3465_s2] sm:$0xff]  ;;  %v2737_v20 = vld [vmem:[%s3464_s1 + $0x30] sm:$0x3f]  ;;  %v2768_v26 = vld [vmem:[%s3464_s1 + $0x28] sm:$0x3f] }
  0x1a   : > { %238 = vmatpush.msra.mxu0 %v2653_v7  ;;  %297 = vmatpush.msra.mxu2 %v2199_v13  ;;  %v2207_v18 = vld [vmem:[%s3465_s2 + $0x40] sm:$0xff]  ;;  %v2777_v27 = vld [vmem:[%s3464_s1 + $0x38] sm:$0x3f]  ;;  %v2216_v29 = vld [vmem:[%s3465_s2 + $0x70] sm:$0xff] }
  0x1b   : > { %267 = vmatpush.msra.mxu1 %v2653_v7  ;;  %320 = vmatpush.msra.mxu3 %v245_v14  ;;  %v2727_v19 = vld [vmem:[%s3464_s1 + $0x20] sm:$0x3f]  ;;  %v2217_v28 = vld [vmem:[%s3465_s2 + $0x78] sm:$0xff]  ;;  %v2215_v30 = vld [vmem:[%s3465_s2 + $0x68] sm:$0xff] }
  0x1c   : > { %239 = vmatpush.msra.mxu0 %v2658_v8  ;;  %396 = vmatpush.msrb.mxu2 %v2650_v6  ;;  %v2745_v21 = vld [vmem:[%s3464_s1 + $0x40] sm:$0x3f]  ;;  %v2231_v32 = vld [vmem:[%s3465_s2 + $0xb8] sm:$0xff]  ;;  %v2230_v34 = vld [vmem:[%s3465_s2 + $0xb0] sm:$0xff] }
  0x1d   : > { %268 = vmatpush.msra.mxu1 %v2658_v8  ;;  %424 = vmatpush.msrb.mxu3 %v2217_v28  ;;  %v2214_v31 = vld [vmem:[%s3465_s2 + $0x60] sm:$0xff]  ;;  %v2224_v33 = vld [vmem:[%s3465_s2 + $0x98] sm:$0xff]  ;;  %v2223_v35 = vld [vmem:[%s3465_s2 + $0x90] sm:$0xff] }
  0x1e   : > { %240 = vmatpush.msra.mxu0 %v2663_v9  ;;  %397 = vmatpush.msrb.mxu2 %v2653_v7  ;;  %v2229_v36 = vld [vmem:[%s3465_s2 + $0xa8] sm:$0xff]  ;;  %v2812_v38 = vld [vmem:[%s2647_s23 + $0x38] sm:$0xff]  ;;  %v2228_v40 = vld [vmem:[%s3465_s2 + $0xa0] sm:$0xff] }
  0x1f   : > { %269 = vmatpush.msra.mxu1 %v2663_v9  ;;  %2196 = vmatmul.msk.f32.vlgmr.msra.gmra.mxu0 %vm221_vm0, %v2670_v10  ;;  %v2222_v37 = vld [vmem:[%s3465_s2 + $0x88] sm:$0xff]  ;;  %v2221_v41 = vld [vmem:[%s3465_s2 + $0x80] sm:$0xff]  ;;  %v2822_v42 = vld [vmem:[%s2647_s23 + $0x30] sm:$0xff] }
  0x20   : > { %2198 = vmatmul.msk.f32.vlgmr.msra.gmra.mxu1 %vm221_vm0, %v2675_v11  ;;  %342 = vmatpush.msrb.mxu0 %v2650_v6  ;;  %v2238_v43 = vld [vmem:[%s3465_s2 + $0xd8] sm:$0xff]  ;;  %v2830_v44 = vld [vmem:[%s2647_s23 + $0x28] sm:$0xff]  ;;  %v2237_v45 = vld [vmem:[%s3465_s2 + $0xd0] sm:$0xff] }
  0x21   : > { %370 = vmatpush.msrb.mxu1 %v2210_v15  ;;  %398 = vmatpush.msrb.mxu2 %v2658_v8  ;;  %v2836_v46 = vld [vmem:[%s2647_s23 + $0x20] sm:$0xff]  ;;  %v2236_v47 = vld [vmem:[%s3465_s2 + $0xc8] sm:$0xff]  ;;  %v2252_v50 = vld [vmem:[%s3465_s2 + $0x118] sm:$0xff] }
  0x22   : > { %343 = vmatpush.msrb.mxu0 %v2653_v7  ;;  %425 = vmatpush.msrb.mxu3 %v2216_v29  ;;  %v2235_v49 = vld [vmem:[%s3465_s2 + $0xc0] sm:$0xff]  ;;  %v2251_v51 = vld [vmem:[%s3465_s2 + $0x110] sm:$0xff]  ;;  %v2250_v52 = vld [vmem:[%s3465_s2 + $0x108] sm:$0xff] }
  0x23   : > { %371 = vmatpush.msrb.mxu1 %v2209_v16  ;;  %399 = vmatpush.msrb.mxu2 %v2663_v9  ;;  %v2249_v53 = vld [vmem:[%s3465_s2 + $0x100] sm:$0xff]  ;;  %v2245_v56 = vld [vmem:[%s3465_s2 + $0xf8] sm:$0xff]  ;;  %v2244_v58 = vld [vmem:[%s3465_s2 + $0xf0] sm:$0xff] }
  0x24   : > { %344 = vmatpush.msrb.mxu0 %v2658_v8  ;;  %426 = vmatpush.msrb.mxu3 %v2215_v30  ;;  %v2243_v59 = vld [vmem:[%s3465_s2 + $0xe8] sm:$0xff]  ;;  %v2242_v60 = vld [vmem:[%s3465_s2 + $0xe0] sm:$0xff]  ;;  %v2274_v63 = vld [vmem:[%s3465_s2 + $0x178] sm:$0xff] }
  0x25   : > { %372 = vmatpush.msrb.mxu1 %v2208_v17  ;;  %v2273_v1 = vld [vmem:[%s3465_s2 + $0x170] sm:$0xff]  ;;  %v2267_v2 = vld [vmem:[%s3465_s2 + $0x158] sm:$0xff]  ;;  %v2272_v4 = vld [vmem:[%s3465_s2 + $0x168] sm:$0xff] }
  0x26   : > { %345 = vmatpush.msrb.mxu0 %v2663_v9  ;;  %427 = vmatpush.msrb.mxu3 %v2214_v31  ;;  %v2262_v3 = vld [vmem:[%s3465_s2 + $0x138] sm:$0xff]  ;;  %v2266_v5 = vld [vmem:[%s3465_s2 + $0x150] sm:$0xff]  ;;  %v2260_v13 = vld [vmem:[%s3465_s2 + $0x128] sm:$0xff] }
  0x27   : > { %2206 = vmatmul.msk.f32.vlgmr.msrb.gmra.mxu0 %vm221_vm0, %v2689_v12  ;;  %373 = vmatpush.msrb.mxu1 %v2207_v18  ;;  %v2264_v15 = vld [vmem:[%s3465_s2 + $0x140] sm:$0xff] }
  0x28   : > { %450 = vmatpush.msra.mxu0 %v2650_v6  ;;  %v2259_v16 = vld [vmem:[%s3465_s2 + $0x120] sm:$0xff] }
  0x29   : > { %478 = vmatpush.msra.mxu1 %v2224_v33 }
  0x2a   : > { %451 = vmatpush.msra.mxu0 %v2653_v7 }
  0x2b   : > { %479 = vmatpush.msra.mxu1 %v2223_v35 }
  0x2c   : > { %452 = vmatpush.msra.mxu0 %v2658_v8 }
  0x2d   : > { %480 = vmatpush.msra.mxu1 %v2222_v37  ;;  %v703_v37 = vld [vmem:[%s2956_s27] sm:$0x3f] }
  0x2e   : > { %453 = vmatpush.msra.mxu0 %v2663_v9 }
  0x2f   : > { %2220 = vmatmul.msk.f32.vlgmr.msra.gmra.mxu0 %vm221_vm0, %v2727_v19  ;;  %481 = vmatpush.msra.mxu1 %v2221_v41 }
  0x30   : > { %558 = vmatpush.msrb.mxu0 %v2650_v6 }
  0x32   : > { %559 = vmatpush.msrb.mxu0 %v2653_v7 }
  0x34   : > { %560 = vmatpush.msrb.mxu0 %v2658_v8 }
  0x36   : > { %561 = vmatpush.msrb.mxu0 %v2663_v9 }
  0x37   : > { %2234 = vmatmul.msk.f32.vlgmr.msrb.gmra.mxu0 %vm221_vm0, %v2737_v20 }
  0x38   : > { %666 = vmatpush.msra.mxu0 %v2650_v6 }
  0x3a   : > { %667 = vmatpush.msra.mxu0 %v2653_v7 }
  0x3c   : > { %668 = vmatpush.msra.mxu0 %v2658_v8 }
  0x3e   : > { %669 = vmatpush.msra.mxu0 %v2663_v9 }
  0x3f   : > { %2248 = vmatmul.msk.f32.vlgmr.msra.gmra.mxu0 %vm221_vm0, %v2745_v21 }
  0x40   : > { %789 = vmatpush.msrb.mxu0 %v2267_v2 }
  0x42   : > { %790 = vmatpush.msrb.mxu0 %v2266_v5  ;;  %v3042_v5 = vld [vmem:[%s2647_s23 + $0x50] sm:$0xff] }
  0x9c   : > { %v242_v22 = vpop.f32.mrf.mxu0 }
  0x9d   : > { %v271_v23 = vpop.f32.mrf.mxu1  ;;  %2204 = vmatmul.msk.f32.vlgmr.msra.gmra.mxu3 %vm221_vm0, %v242_v22 }
  0x9e   : > { %2203 = vmatmul.msk.f32.vlgmr.msra.gmra.mxu2 %vm221_vm0, %v271_v23  ;;  %532 = vmatpush.msra.mxu3 %v2231_v32 }
  0x9f   : > { %504 = vmatpush.msra.mxu2 %v2650_v6 }
  0xa0   : > { %533 = vmatpush.msra.mxu3 %v2230_v34 }
  0xa1   : > { %505 = vmatpush.msra.mxu2 %v2653_v7 }
  0xa2   : > { %534 = vmatpush.msra.mxu3 %v2229_v36 }
  0xa3   : > { %506 = vmatpush.msra.mxu2 %v2658_v8 }
  0xa4   : > { %v347_v25 = vpop.f32.mrf.mxu0  ;;  %535 = vmatpush.msra.mxu3 %v2228_v40 }
  0xa5   : > { %507 = vmatpush.msra.mxu2 %v2663_v9  ;;  %2211 = vmatmul.msk.f32.vlgmr.msrb.gmra.mxu1 %vm221_vm0, %v347_v25 }
  0xa6   : > { %2213 = vmatmul.msk.f32.vlgmr.msrb.gmra.mxu2 %vm221_vm0, %v2756_v24  ;;  %586 = vmatpush.msrb.mxu1 %v2238_v43 }
  0xa7   : > { %612 = vmatpush.msrb.mxu2 %v2650_v6  ;;  %v2261_v6 = vld [vmem:[%s3465_s2 + $0x130] sm:$0xff] }
  0xa8   : > { %587 = vmatpush.msrb.mxu1 %v2237_v45 }
  0xa9   : > { %613 = vmatpush.msrb.mxu2 %v2653_v7  ;;  %v2271_v7 = vld [vmem:[%s3465_s2 + $0x160] sm:$0xff] }
  0xaa   : > { %588 = vmatpush.msrb.mxu1 %v2236_v47  ;;  %v2286_v47 = vld [vmem:[%s3465_s2 + $0x1b8] sm:$0xff] }
  0xab   : > { %614 = vmatpush.msrb.mxu2 %v2658_v8 }
  0xac   : > { %v455_v39 = vpop.f32.mrf.mxu0  ;;  %589 = vmatpush.msrb.mxu1 %v2235_v49 }
  0xad   : > { %615 = vmatpush.msrb.mxu2 %v2663_v9  ;;  %2225 = vmatmul.msk.f32.vlgmr.msra.gmra.mxu1 %vm221_vm0, %v455_v39  ;;  %v2265_v9 = vld [vmem:[%s3465_s2 + $0x148] sm:$0xff] }
  0xae   : > { %2227 = vmatmul.msk.f32.vlgmr.msra.gmra.mxu2 %vm221_vm0, %v2768_v26  ;;  %694 = vmatpush.msra.mxu1 %v2252_v50  ;;  %v2278_v50 = vld [vmem:[%s3465_s2 + $0x188] sm:$0xff] }
  0xaf   : > { %736 = vmatpush.msra.mxu2 %v2812_v38  ;;  %791 = vmatpush.msrb.mxu0 %v2265_v9  ;;  %v3050_v9 = vld [vmem:[%s2647_s23 + $0x40] sm:$0xff] }
  0xb0   : > { %695 = vmatpush.msra.mxu1 %v2251_v51  ;;  %v2298_v51 = vld [vmem:[%s3465_s2 + $0x1f8] sm:$0xff] }
  0xb1   : > { %737 = vmatpush.msra.mxu2 %v2822_v42  ;;  %792 = vmatpush.msrb.mxu0 %v2264_v15 }
  0xb2   : > { %696 = vmatpush.msra.mxu1 %v2250_v52  ;;  %v2277_v52 = vld [vmem:[%s3465_s2 + $0x180] sm:$0xff] }
  0xb3   : > { %738 = vmatpush.msra.mxu2 %v2830_v44  ;;  %881 = vmatpush.msra.mxu0 %v2812_v38 }
  0xb4   : > { %v563_v48 = vpop.f32.mrf.mxu0  ;;  %697 = vmatpush.msra.mxu1 %v2249_v53  ;;  %v2297_v53 = vld [vmem:[%s3465_s2 + $0x1f0] sm:$0xff] }
  0xb5   : > { %739 = vmatpush.msra.mxu2 %v2836_v46  ;;  %2239 = vmatmul.msk.f32.vlgmr.msrb.gmra.mxu1 %vm221_vm0, %v563_v48  ;;  %v2283_v48 = vld [vmem:[%s3465_s2 + $0x1a0] sm:$0xff] }
  0xb6   : > { %2241 = vmatmul.msk.f32.vlgmr.msrb.gmra.mxu2 %vm221_vm0, %v2777_v27  ;;  %812 = vmatpush.msrb.mxu1 %v2262_v3 }
  0xb7   : > { %832 = vmatpush.msrb.mxu2 %v2812_v38  ;;  %882 = vmatpush.msra.mxu0 %v2822_v42 }
  0xb8   : > { %813 = vmatpush.msrb.mxu1 %v2261_v6 }
  0xb9   : > { %833 = vmatpush.msrb.mxu2 %v2822_v42  ;;  %883 = vmatpush.msra.mxu0 %v2830_v44 }
  0xba   : > { %814 = vmatpush.msrb.mxu1 %v2260_v13 }
  0xbb   : > { %834 = vmatpush.msrb.mxu2 %v2830_v44  ;;  %884 = vmatpush.msra.mxu0 %v2836_v46 }
  0xbc   : > { %v671_v54 = vpop.f32.mrf.mxu0  ;;  %815 = vmatpush.msrb.mxu1 %v2259_v16 }
  0xbd   : > { %835 = vmatpush.msrb.mxu2 %v2836_v46  ;;  %2253 = vmatmul.msk.f32.vlgmr.msra.gmra.mxu1 %vm221_vm0, %v671_v54  ;;  %v2292_v54 = vld [vmem:[%s3465_s2 + $0x1d8] sm:$0xff] }
  0xbe   : > { %2258 = vmatmul.msk.f32.vlgmr.msra.gmra.mxu2 %vm221_vm0, %v2670_v10 }
  0xbf   : > { %930 = vmatpush.msra.mxu2 %v2812_v38 }
  0xc1   : > { %931 = vmatpush.msra.mxu2 %v2822_v42 }
  0xc3   : > { %932 = vmatpush.msra.mxu2 %v2830_v44 }
  0xc5   : > { %933 = vmatpush.msra.mxu2 %v2836_v46 }
  0xc6   : > { %2270 = vmatmul.msk.f32.vlgmr.msrb.gmra.mxu2 %vm221_vm0, %v2689_v12 }
  0xc7   : > { %1028 = vmatpush.msrb.mxu2 %v2812_v38 }
  0xc9   : > { %1029 = vmatpush.msrb.mxu2 %v2822_v42 }
  0xcb   : > { %1030 = vmatpush.msrb.mxu2 %v2830_v44 }
  0xcd   : > { %1031 = vmatpush.msrb.mxu2 %v2836_v46 }
  0xce   : > { %2282 = vmatmul.msk.f32.vlgmr.msra.gmra.mxu2 %vm221_vm0, %v2727_v19 }
  0xcf   : > { %1126 = vmatpush.msra.mxu2 %v2812_v38 }
  0xd1   : > { %1127 = vmatpush.msra.mxu2 %v2822_v42 }
  0xd3   : > { %1128 = vmatpush.msra.mxu2 %v2830_v44 }
  0xd5   : > { %1129 = vmatpush.msra.mxu2 %v2836_v46 }
  0xd6   : > { %2294 = vmatmul.msk.f32.vlgmr.msrb.gmra.mxu2 %vm221_vm0, %v2737_v20 }
  0xde   : > { %2306 = vmatmul.msk.f32.vlgmr.msra.gmra.mxu2 %vm221_vm0, %v2745_v21 }
 0x120   : > { %v322_v17 = vpop.f32.mrf.mxu3 }
 0x121   : > { %v2868_v55 = vpop.f32.mrf.mxu2 }
 0x122   : > { %v375_v8 = vpop.f32.mrf.mxu1  ;;  %v323_v22 = vadd.f32 %v322_v17, %v2868_v55  ;;  %v2296_v55 = vld [vmem:[%s3465_s2 + $0x1e8] sm:$0xff]  ;;  %v2304_v17 = vld [vmem:[%s3465_s2 + $0x218] sm:$0xff] }
 0x124   : > { %v378_v25 = vadd.f32 %v375_v8, %v323_v22  ;;  %v2303_v22 = vld [vmem:[%s3465_s2 + $0x210] sm:$0xff] }
 0x129   : > { %v401_v57 = vpop.f32.mrf.mxu2 }
 0x12a   : > { %2218 = vmatmul.msk.f32.vlgmr.msrb.gmra.mxu3 %vm221_vm0, %v401_v57  ;;  %v483_v18 = vpop.f32.mrf.mxu1  ;;  %v2295_v57 = vld [vmem:[%s3465_s2 + $0x1e0] sm:$0xff] }
 0x12b   : > { %640 = vmatpush.msrb.mxu3 %v2245_v56  ;;  %v2291_v56 = vld [vmem:[%s3465_s2 + $0x1d0] sm:$0xff] }
 0x12d   : > { %641 = vmatpush.msrb.mxu3 %v2244_v58  ;;  %v2290_v58 = vld [vmem:[%s3465_s2 + $0x1c8] sm:$0xff] }
 0x12f   : > { %642 = vmatpush.msrb.mxu3 %v2243_v59  ;;  %v2310_v59 = vld [vmem:[%s3465_s2 + $0x238] sm:$0xff] }
 0x131   : > { %v509_v61 = vpop.f32.mrf.mxu2  ;;  %643 = vmatpush.msrb.mxu3 %v2242_v60 }
 0x132   : > { %2232 = vmatmul.msk.f32.vlgmr.msra.gmra.mxu3 %vm221_vm0, %v509_v61  ;;  %v591_v29 = vpop.f32.mrf.mxu1  ;;  %v2289_v61 = vld [vmem:[%s3465_s2 + $0x1c0] sm:$0xff] }
 0x133   : > { %761 = vmatpush.msra.mxu3 %v2812_v38 }
 0x135   : > { %762 = vmatpush.msra.mxu3 %v2822_v42 }
 0x137   : > { %763 = vmatpush.msra.mxu3 %v2830_v44 }
 0x139   : > { %v617_v62 = vpop.f32.mrf.mxu2  ;;  %764 = vmatpush.msra.mxu3 %v2836_v46 }
 0x13a   : > { %2246 = vmatmul.msk.f32.vlgmr.msrb.gmra.mxu3 %vm221_vm0, %v617_v62  ;;  %v699_v35 = vpop.f32.mrf.mxu1  ;;  %v2309_v62 = vld [vmem:[%s3465_s2 + $0x230] sm:$0xff] }
 0x13b   : > { %860 = vmatpush.msrb.mxu3 %v2274_v63  ;;  %v2308_v63 = vld [vmem:[%s3465_s2 + $0x228] sm:$0xff] }
 0x13d   : > { %861 = vmatpush.msrb.mxu3 %v2273_v1 }
 0x13f   : > { %862 = vmatpush.msrb.mxu3 %v2272_v4  ;;  %v3039_v4 = vld [vmem:[%s2647_s23 + $0x58] sm:$0xff] }
 0x141   : > { %v741_v0 = vpop.f32.mrf.mxu2  ;;  %863 = vmatpush.msrb.mxu3 %v2271_v7  ;;  %v3046_v7 = vld [vmem:[%s2647_s23 + $0x48] sm:$0xff] }
 0x142   : > { %2263 = vmatmul.msk.f32.vlgmr.msra.gmra.mxu3 %vm221_vm0, %v2675_v11  ;;  %2269 = vmatmul.msk.f32.vlgmr.msrb.gmra.mxu1 %vm221_vm0, %v741_v0  ;;  %v2307_v0 = vld [vmem:[%s3465_s2 + $0x220] sm:$0xff] }
 0x143   : > { %958 = vmatpush.msra.mxu3 %v2286_v47  ;;  %v2331_v47 = vld [vmem:[%s3465_s2 + $0x288] sm:$0xff] }
 0x149   : > { %v837_v14 = vpop.f32.mrf.mxu2 }
 0x14a   : > { %2275 = vmatmul.msk.f32.vlgmr.msrb.gmra.mxu3 %vm221_vm0, %v837_v14 }
 0x151   : > { %v935_v49 = vpop.f32.mrf.mxu2 }
 0x159   : > { %v1033_v60 = vpop.f32.mrf.mxu2 }
 0x161   : > { %v1131_v1 = vpop.f32.mrf.mxu2 }
 0x1ad   : > { %v429_v23 = vpop.f32.mrf.mxu3 }
 0x1ae   : > { %v432_v28 = vadd.f32 %v429_v23, %v378_v25  ;;  %v2302_v23 = vld [vmem:[%s3465_s2 + $0x208] sm:$0xff]  ;;  %v2301_v25 = vld [vmem:[%s3465_s2 + $0x200] sm:$0xff] }
 0x1b0   : > { %v486_v31 = vadd.f32 %v483_v18, %v432_v28 }
 0x1b5   : > { %v537_v30 = vpop.f32.mrf.mxu3 }
 0x1b6   : > { %v540_v32 = vadd.f32 %v537_v30, %v486_v31  ;;  %v2326_v30 = vld [vmem:[%s3465_s2 + $0x278] sm:$0xff] }
 0x1b7   : > { %v2321_v31 = vld [vmem:[%s3465_s2 + $0x258] sm:$0xff]  ;;  %1249 = vmatpush.msrb.mxu2 %v2326_v30  ;;  %v3218_v30 = vld [vmem:[%s2647_s23 + $0x60] sm:$0xff] }
 0x1b8   : > { %v594_v33 = vadd.f32 %v591_v29, %v540_v32  ;;  %v2325_v32 = vld [vmem:[%s3465_s2 + $0x270] sm:$0xff] }
 0x1b9   : > { %1250 = vmatpush.msrb.mxu2 %v2325_v32 }
 0x1bd   : > { %v645_v34 = vpop.f32.mrf.mxu3 }
 0x1be   : > { %v648_v36 = vadd.f32 %v645_v34, %v594_v33  ;;  %v2320_v33 = vld [vmem:[%s3465_s2 + $0x250] sm:$0xff] }
 0x1c0   : > { %v702_v39 = vadd.f32 %v699_v35, %v648_v36  ;;  %v2324_v35 = vld [vmem:[%s3465_s2 + $0x268] sm:$0xff] }
 0x1c1   : > { %v2319_v36 = vld [vmem:[%s3465_s2 + $0x248] sm:$0xff]  ;;  %1251 = vmatpush.msrb.mxu2 %v2324_v35 }
 0x1c2   : > { %v704_v40 = vsub.f32 %v702_v39, %v703_v37  ;;  %v2323_v37 = vld [vmem:[%s3465_s2 + $0x260] sm:$0xff] }
 0x1c3   : > { %v2318_v39 = vld [vmem:[%s3465_s2 + $0x240] sm:$0xff]  ;;  %1252 = vmatpush.msrb.mxu2 %v2323_v37  ;;  %v2369_v37 = vld [vmem:[%s3465_s2 + $0x358] sm:$0xff] }
 0x1c4   : > { %v705_v41 = vand.u32 2147483647, %v704_v40  ;;  %v817_v40 = vpop.f32.mrf.mxu1 }
 0x1c5   : > { %v766_v43 = vpop.f32.mrf.mxu3  ;;  %1341 = vmatpush.msra.mxu2 %v3039_v4 }
 0x1c6   : > { %2268 = vmatmul.msk.f32.vlgmr.msrb.gmra.mxu0 %vm221_vm0, %v766_v43  ;;  %v707_v45 = vsel %vm706_vm1, %v705_v41, 0.0  ;;  %v2333_v43 = vld [vmem:[%s3465_s2 + $0x298] sm:$0xff] }
 0x1c7   : > { %708 = vadd.xlane.f32.xlu0 %v707_v45  ;;  %979 = vmatpush.msrb.mxu0 %v2812_v38  ;;  %v2332_v45 = vld [vmem:[%s3465_s2 + $0x290] sm:$0xff] }
 0x1c8   : > { %1342 = vmatpush.msra.mxu2 %v3042_v5 }
 0x1c9   : > { %980 = vmatpush.msrb.mxu0 %v2822_v42 }
 0x1ca   : > { %1343 = vmatpush.msra.mxu2 %v3046_v7 }
 0x1cb   : > { %981 = vmatpush.msrb.mxu0 %v2830_v44 }
 0x1cc   : > { %1344 = vmatpush.msra.mxu2 %v3050_v9 }
 0x1cd   : > { %982 = vmatpush.msrb.mxu0 %v2836_v46  ;;  %v865_v34 = vpop.f32.mrf.mxu3 }
 0x1ce   : > { %2276 = vmatmul.msk.f32.vlgmr.msra.gmra.mxu0 %vm221_vm0, %v2756_v24 }
 0x1cf   : > { %1077 = vmatpush.msra.mxu0 %v2812_v38  ;;  %v2285_v38 = vld [vmem:[%s3465_s2 + $0x1b0] sm:$0xff] }
 0x1d0   : > { %959 = vmatpush.msra.mxu3 %v2285_v38 }
 0x1d1   : > { %1078 = vmatpush.msra.mxu0 %v2822_v42  ;;  %v2280_v42 = vld [vmem:[%s3465_s2 + $0x198] sm:$0xff] }
 0x1d2   : > { %909 = vmatpush.msra.mxu1 %v2280_v42  ;;  %v2330_v42 = vld [vmem:[%s3465_s2 + $0x280] sm:$0xff] }
 0x1d3   : > { %1079 = vmatpush.msra.mxu0 %v2830_v44  ;;  %v2284_v44 = vld [vmem:[%s3465_s2 + $0x1a8] sm:$0xff] }
 0x1d4   : > { %960 = vmatpush.msra.mxu3 %v2284_v44 }
 0x1d5   : > { %1080 = vmatpush.msra.mxu0 %v2836_v46  ;;  %v2279_v46 = vld [vmem:[%s3465_s2 + $0x190] sm:$0xff] }
 0x1d6   : > { %2288 = vmatmul.msk.f32.vlgmr.msrb.gmra.mxu0 %vm221_vm0, %v2768_v26  ;;  %910 = vmatpush.msra.mxu1 %v2279_v46 }
 0x1d7   : > { %961 = vmatpush.msra.mxu3 %v2283_v48  ;;  %1196 = vmatpush.msrb.mxu0 %v3039_v4 }
 0x1d8   : > { %2287 = vmatmul.msk.f32.vlgmr.msra.gmra.mxu3 %vm221_vm0, %v935_v49  ;;  %911 = vmatpush.msra.mxu1 %v2278_v50 }
 0x1d9   : > { %1056 = vmatpush.msrb.mxu3 %v2298_v51  ;;  %1197 = vmatpush.msrb.mxu0 %v3042_v5 }
 0x1da   : > { %912 = vmatpush.msra.mxu1 %v2277_v52 }
 0x1db   : > { %1057 = vmatpush.msrb.mxu3 %v2297_v53  ;;  %1198 = vmatpush.msrb.mxu0 %v3046_v7 }
 0x1dc   : > { %1007 = vmatpush.msrb.mxu1 %v2292_v54 }
 0x1dd   : > { %1058 = vmatpush.msrb.mxu3 %v2296_v55  ;;  %1199 = vmatpush.msrb.mxu0 %v3050_v9 }
 0x1de   : > { %2300 = vmatmul.msk.f32.vlgmr.msra.gmra.mxu0 %vm221_vm0, %v2777_v27  ;;  %1008 = vmatpush.msrb.mxu1 %v2291_v56 }
 0x1df   : > { %1059 = vmatpush.msrb.mxu3 %v2295_v57  ;;  %1292 = vmatpush.msra.mxu0 %v3039_v4 }
 0x1e0   : > { %2299 = vmatmul.msk.f32.vlgmr.msrb.gmra.mxu3 %vm221_vm0, %v1033_v60  ;;  %1009 = vmatpush.msrb.mxu1 %v2290_v58 }
 0x1e1   : > { %1154 = vmatpush.msra.mxu3 %v2310_v59  ;;  %1293 = vmatpush.msra.mxu0 %v3042_v5  ;;  %v2312_v59 = vld [vmem:[%s2956_s27 + $0x8] sm:$0x3f] }
 0x1e2   : > { %1010 = vmatpush.msrb.mxu1 %v2289_v61 }
 0x1e3   : > { %1155 = vmatpush.msra.mxu3 %v2309_v62  ;;  %1294 = vmatpush.msra.mxu0 %v3046_v7 }
 0x1e5   : > { %1156 = vmatpush.msra.mxu3 %v2308_v63  ;;  %1295 = vmatpush.msra.mxu0 %v3050_v9 }
 0x1e6   : > { %2317 = vmatmul.msk.f32.vlgmr.msrb.gmra.mxu0 %vm221_vm0, %v2670_v10 }
 0x1e7   : > { %1157 = vmatpush.msra.mxu3 %v2307_v0  ;;  %1390 = vmatpush.msrb.mxu0 %v3039_v4 }
 0x1e8   : > { %2311 = vmatmul.msk.f32.vlgmr.msra.gmra.mxu3 %vm221_vm0, %v1131_v1  ;;  %v2339_v1 = vld [vmem:[%s3465_s2 + $0x2b8] sm:$0xff] }
 0x1e9   : > { %1391 = vmatpush.msrb.mxu0 %v3042_v5  ;;  %1272 = vmatpush.msrb.mxu3 %v2321_v31  ;;  %v2355_v31 = vld [vmem:[%s3465_s2 + $0x308] sm:$0xff] }
 0x1eb   : > { %1392 = vmatpush.msrb.mxu0 %v3046_v7  ;;  %1273 = vmatpush.msrb.mxu3 %v2320_v33 }
 0x1ed   : > { %1393 = vmatpush.msrb.mxu0 %v3050_v9  ;;  %1274 = vmatpush.msrb.mxu3 %v2319_v36 }
 0x1ee   : > { %2329 = vmatmul.msk.f32.vlgmr.msra.gmra.mxu0 %vm221_vm0, %v2689_v12 }
 0x1ef   : > { %1488 = vmatpush.msra.mxu0 %v3039_v4  ;;  %1275 = vmatpush.msrb.mxu3 %v2318_v39  ;;  %v2368_v39 = vld [vmem:[%s3465_s2 + $0x350] sm:$0xff] }
 0x1f1   : > { %1489 = vmatpush.msra.mxu0 %v3042_v5  ;;  %1369 = vmatpush.msra.mxu3 %v2339_v1 }
 0x1f3   : > { %1490 = vmatpush.msra.mxu0 %v3046_v7 }
 0x1f5   : > { %1491 = vmatpush.msra.mxu0 %v3050_v9 }
 0x1f6   : > { %2341 = vmatmul.msk.f32.vlgmr.msrb.gmra.mxu0 %vm221_vm0, %v2727_v19 }
 0x1f7   : > { %1586 = vmatpush.msrb.mxu0 %v3039_v4 }
 0x1f9   : > { %1587 = vmatpush.msrb.mxu0 %v3042_v5 }
 0x1fb   : > { %1588 = vmatpush.msrb.mxu0 %v3046_v7 }
 0x1fd   : > { %1589 = vmatpush.msrb.mxu0 %v3050_v9 }
 0x1fe   : > { %2353 = vmatmul.msk.f32.vlgmr.msra.gmra.mxu0 %vm221_vm0, %v2737_v20 }
 0x206   : > { %2365 = vmatmul.msk.f32.vlgmr.msrb.gmra.mxu0 %vm221_vm0, %v2745_v21 }
 0x23a   : > { %v709_v2 = vpop.xlane.xlu0 %708 }
 0x23b   : > { %v710_v3 = vrot.slane %v709_v2, 4 }
 0x23d   : > { %v711_v6 = vadd.f32 %v710_v3, %v709_v2  ;;  %v2338_v2 = vld [vmem:[%s3465_s2 + $0x2b0] sm:$0xff]  ;;  %v2337_v3 = vld [vmem:[%s3465_s2 + $0x2a8] sm:$0xff] }
 0x23e   : > { %1370 = vmatpush.msra.mxu3 %v2338_v2 }
 0x23f   : > { %v712_v8 = vrot.slane %v711_v6, 2 }
 0x240   : > { %1371 = vmatpush.msra.mxu3 %v2337_v3 }
 0x241   : > { %v713_v13 = vadd.f32 %v712_v8, %v711_v6  ;;  %v2345_v6 = vld [vmem:[%s3465_s2 + $0x2d8] sm:$0xff]  ;;  %v2344_v8 = vld [vmem:[%s3465_s2 + $0x2d0] sm:$0xff] }
 0x243   : > { %v3053_v14 = vpop.f32.mrf.mxu0  ;;  %v714_v15 = vrot.slane %v713_v13, 1 }
 0x244   : > { %v818_v44 = vadd.f32 %v817_v40, %v3053_v14  ;;  %v2343_v14 = vld [vmem:[%s3465_s2 + $0x2c8] sm:$0xff] }
 0x245   : > { %v715_v16 = vadd.f32 %v714_v15, %v713_v13  ;;  %v2349_v13 = vld [vmem:[%s3465_s2 + $0x2e8] sm:$0xff]  ;;  %v3194_v15 = vld [vmem:[%s2647_s23 + $0x78] sm:$0xff] }
 0x246   : > { %v868_v49 = vadd.f32 %v865_v34, %v818_v44  ;;  %v2354_v34 = vld [vmem:[%s3465_s2 + $0x300] sm:$0xff] }
 0x247   : > { %2437 = vpush %v715_v16  ;;  %v2348_v16 = vld [vmem:[%s3465_s2 + $0x2e0] sm:$0xff] }
 0x248   : > { %v2360_v44 = vld [vmem:[%s3465_s2 + $0x320] sm:$0xff] }
 0x24b   : > { %v886_v18 = vpop.f32.mrf.mxu0 }
 0x24c   : > { %2281 = vmatmul.msk.f32.vlgmr.msra.gmra.mxu1 %vm221_vm0, %v886_v18  ;;  %v3204_v18 = vld [vmem:[%s2647_s23 + $0x70] sm:$0xff] }
 0x24d   : > { %1105 = vmatpush.msra.mxu1 %v2304_v17  ;;  %v2342_v17 = vld [vmem:[%s3465_s2 + $0x2c0] sm:$0xff] }
 0x24f   : > { %1106 = vmatpush.msra.mxu1 %v2303_v22 }
 0x251   : > { %1107 = vmatpush.msra.mxu1 %v2302_v23  ;;  %v2357_v23 = vld [vmem:[%s3465_s2 + $0x318] sm:$0xff] }
 0x253   : > { %v984_v28 = vpop.f32.mrf.mxu0  ;;  %1108 = vmatpush.msra.mxu1 %v2301_v25  ;;  %v3212_v25 = vld [vmem:[%s2647_s23 + $0x68] sm:$0xff]  ;;  %s205_s23 = scalar_lea.vmem [#allocation2], %s2191_s11 }
 0x254   : > { %2293 = vmatmul.msk.f32.vlgmr.msrb.gmra.mxu1 %vm221_vm0, %v984_v28  ;;  %s2113_s22 = sshll.u32 %s205_s23, 4  ;;  %s2114_s22 = int_to_ptr.vmem [resolvable:$true] %s2113_s22 }
 0x255   : > { %1221 = vmatpush.msrb.mxu1 %v3039_v4 }
 0x257   : > { %1222 = vmatpush.msrb.mxu1 %v3042_v5 }
 0x259   : > { %1223 = vmatpush.msrb.mxu1 %v3046_v7 }
 0x25b   : > { %v1082_v29 = vpop.f32.mrf.mxu0  ;;  %1224 = vmatpush.msrb.mxu1 %v3050_v9  ;;  %v963_v38 = vpop.f32.mrf.mxu3 }
 0x25c   : > { %2305 = vmatmul.msk.f32.vlgmr.msra.gmra.mxu1 %vm221_vm0, %v1082_v29  ;;  %v2356_v29 = vld [vmem:[%s3465_s2 + $0x310] sm:$0xff] }
 0x25d   : > { %1320 = vmatpush.msra.mxu1 %v2333_v43  ;;  %v2366_v43 = vld [vmem:[%s3465_s2 + $0x340] sm:$0xff] }
 0x25f   : > { %1321 = vmatpush.msra.mxu1 %v2332_v45 }
 0x261   : > { %1322 = vmatpush.msra.mxu1 %v2331_v47 }
 0x263   : > { %v1201_v41 = vpop.f32.mrf.mxu0  ;;  %1323 = vmatpush.msra.mxu1 %v2330_v42  ;;  %v1061_v51 = vpop.f32.mrf.mxu3  ;;  %v2362_v42 = vld [vmem:[%s3465_s2 + $0x330] sm:$0xff] }
 0x264   : > { %2322 = vmatmul.msk.f32.vlgmr.msrb.gmra.mxu1 %vm221_vm0, %v2675_v11  ;;  %2328 = vmatmul.msk.f32.vlgmr.msrb.gmra.mxu3 %vm221_vm0, %v1201_v41 }
 0x265   : > { %1418 = vmatpush.msrb.mxu1 %v2345_v6 }
 0x267   : > { %1419 = vmatpush.msrb.mxu1 %v2344_v8 }
 0x269   : > { %1420 = vmatpush.msrb.mxu1 %v2343_v14  ;;  %v2371_v14 = vld [vmem:[%s2956_s27 + $0x10] sm:$0x3f] }
 0x26b   : > { %v1297_v48 = vpop.f32.mrf.mxu0  ;;  %v1159_v57 = vpop.f32.mrf.mxu3  ;;  %1421 = vmatpush.msrb.mxu1 %v2342_v17 }
 0x26c   : > { %2334 = vmatmul.msk.f32.vlgmr.msra.gmra.mxu1 %vm221_vm0, %v1297_v48  ;;  %v2392_v48 = vld [vmem:[%s3465_s2 + $0x3b8] sm:$0xff] }
 0x26d   : > { %1516 = vmatpush.msra.mxu1 %v2357_v23 }
 0x26f   : > { %1517 = vmatpush.msra.mxu1 %v2356_v29  ;;  %v2404_v29 = vld [vmem:[%s3465_s2 + $0x3f8] sm:$0xff] }
 0x271   : > { %1518 = vmatpush.msra.mxu1 %v2355_v31  ;;  %v2416_v31 = vld [vmem:[%s3465_s2 + $0x438] sm:$0xff] }
 0x273   : > { %1519 = vmatpush.msra.mxu1 %v2354_v34  ;;  %v2410_v34 = vld [vmem:[%s3465_s2 + $0x418] sm:$0xff] }
 0x278   : > { %s2438_s9 = spop %2437 }
 0x2c9   : > { %v914_v46 = vpop.f32.mrf.mxu1 }
 0x2ca   : > { %v917_v50 = vadd.f32 %v914_v46, %v868_v49 }
 0x2cc   : > { %v966_v53 = vadd.f32 %v963_v38, %v917_v50  ;;  %v2391_v50 = vld [vmem:[%s3465_s2 + $0x3b0] sm:$0xff] }
 0x2d1   : > { %v1012_v52 = vpop.f32.mrf.mxu1 }
 0x2d2   : > { %v1015_v54 = vadd.f32 %v1012_v52, %v966_v53  ;;  %v2384_v52 = vld [vmem:[%s3465_s2 + $0x390] sm:$0xff] }
 0x2d3   : > { %v2379_v53 = vld [vmem:[%s3465_s2 + $0x370] sm:$0xff] }
 0x2d4   : > { %v1064_v55 = vadd.f32 %v1061_v51, %v1015_v54  ;;  %v2380_v51 = vld [vmem:[%s3465_s2 + $0x378] sm:$0xff]  ;;  %v2389_v54 = vld [vmem:[%s3465_s2 + $0x3a0] sm:$0xff] }
 0x2d9   : > { %v1110_v56 = vpop.f32.mrf.mxu1 }
 0x2da   : > { %v1113_v58 = vadd.f32 %v1110_v56, %v1064_v55  ;;  %v2383_v56 = vld [vmem:[%s3465_s2 + $0x388] sm:$0xff] }
 0x2dc   : > { %v1162_v60 = vadd.f32 %v1159_v57, %v1113_v58  ;;  %v2378_v57 = vld [vmem:[%s3465_s2 + $0x368] sm:$0xff] }
 0x2de   : > { %v1165_v61 = vsub.f32 %v1162_v60, %v2312_v59  ;;  %v2382_v59 = vld [vmem:[%s3465_s2 + $0x380] sm:$0xff] }
 0x2df   : > { %v2377_v60 = vld [vmem:[%s3465_s2 + $0x360] sm:$0xff] }
 0x2e0   : > { %v1166_v62 = vand.u32 2147483647, %v1165_v61 }
 0x2e1   : > { %v1226_v63 = vpop.f32.mrf.mxu1 }
 0x2e2   : > { %2327 = vmatmul.msk.f32.vlgmr.msrb.gmra.mxu2 %vm221_vm0, %v1226_v63  ;;  %v1167_v0 = vsel %vm706_vm1, %v1166_v62, 0.0 }
 0x2e3   : > { %1168 = vadd.xlane.f32.xlu0 %v1167_v0  ;;  %1439 = vmatpush.msrb.mxu2 %v3039_v4 }
 0x2e5   : > { %1440 = vmatpush.msrb.mxu2 %v3042_v5 }
 0x2e7   : > { %1441 = vmatpush.msrb.mxu2 %v3046_v7  ;;  %v1277_v61 = vpop.f32.mrf.mxu3 }
 0x2e9   : > { %1442 = vmatpush.msrb.mxu2 %v3050_v9  ;;  %v1325_v55 = vpop.f32.mrf.mxu1 }
 0x2ea   : > { %2335 = vmatmul.msk.f32.vlgmr.msra.gmra.mxu2 %vm221_vm0, %v2756_v24 }
 0x2eb   : > { %1537 = vmatpush.msra.mxu2 %v3039_v4  ;;  %v2336_v4 = vld [vmem:[%s3465_s2 + $0x2a0] sm:$0xff] }
 0x2ec   : > { %1372 = vmatpush.msra.mxu3 %v2336_v4 }
 0x2ed   : > { %1538 = vmatpush.msra.mxu2 %v3042_v5  ;;  %v2351_v5 = vld [vmem:[%s3465_s2 + $0x2f8] sm:$0xff] }
 0x2ee   : > { %1467 = vmatpush.msrb.mxu3 %v2351_v5 }
 0x2ef   : > { %1539 = vmatpush.msra.mxu2 %v3046_v7  ;;  %v2350_v7 = vld [vmem:[%s3465_s2 + $0x2f0] sm:$0xff] }
 0x2f0   : > { %1468 = vmatpush.msrb.mxu3 %v2350_v7 }
 0x2f1   : > { %1540 = vmatpush.msra.mxu2 %v3050_v9  ;;  %v1395_v9 = vpop.f32.mrf.mxu0 }
 0x2f2   : > { %2347 = vmatmul.msk.f32.vlgmr.msrb.gmra.mxu2 %vm221_vm0, %v2768_v26  ;;  %1469 = vmatpush.msrb.mxu3 %v2349_v13 }
 0x2f3   : > { %1656 = vmatpush.msrb.mxu2 %v3194_v15  ;;  %2346 = vmatmul.msk.f32.vlgmr.msrb.gmra.mxu1 %vm221_vm0, %v1395_v9 }
 0x2f4   : > { %1470 = vmatpush.msrb.mxu3 %v2348_v16  ;;  %1614 = vmatpush.msrb.mxu1 %v2369_v37  ;;  %v2413_v37 = vld [vmem:[%s3465_s2 + $0x420] sm:$0xff] }
 0x2f5   : > { %1657 = vmatpush.msrb.mxu2 %v3204_v18 }
 0x2f6   : > { %1615 = vmatpush.msrb.mxu1 %v2368_v39  ;;  %v2408_v39 = vld [vmem:[%s3465_s2 + $0x408] sm:$0xff] }
 0x2f7   : > { %1658 = vmatpush.msrb.mxu2 %v3212_v25 }
 0x2f9   : > { %v1493_v33 = vpop.f32.mrf.mxu0  ;;  %1659 = vmatpush.msrb.mxu2 %v3218_v30 }
 0x2fa   : > { %2359 = vmatmul.msk.f32.vlgmr.msra.gmra.mxu2 %vm221_vm0, %v2777_v27 }
 0x2fb   : > { %1752 = vmatpush.msra.mxu2 %v3194_v15  ;;  %2358 = vmatmul.msk.f32.vlgmr.msra.gmra.mxu1 %vm221_vm0, %v1493_v33  ;;  %v2415_v33 = vld [vmem:[%s3465_s2 + $0x430] sm:$0xff] }
 0x2fd   : > { %1753 = vmatpush.msra.mxu2 %v3204_v18 }
 0x2ff   : > { %1754 = vmatpush.msra.mxu2 %v3212_v25 }
 0x301   : > { %1755 = vmatpush.msra.mxu2 %v3218_v30  ;;  %v1591_v45 = vpop.f32.mrf.mxu0 }
 0x302   : > { %2376 = vmatmul.msk.f32.vlgmr.msrb.gmra.mxu2 %vm221_vm0, %v2670_v10  ;;  %v2367_v10 = vld [vmem:[%s3465_s2 + $0x348] sm:$0xff] }
 0x303   : > { %1616 = vmatpush.msrb.mxu1 %v2367_v10  ;;  %1850 = vmatpush.msrb.mxu2 %v3194_v15 }
 0x305   : > { %1617 = vmatpush.msrb.mxu1 %v2366_v43  ;;  %1851 = vmatpush.msrb.mxu2 %v3204_v18  ;;  %v2427_v43 = vld [vmem:[%s3465_s2 + $0x470] sm:$0xff] }
 0x306   : > { %2370 = vmatmul.msk.f32.vlgmr.msrb.gmra.mxu1 %vm221_vm0, %v1591_v45  ;;  %v2426_v45 = vld [vmem:[%s3465_s2 + $0x468] sm:$0xff] }
 0x307   : > { %1852 = vmatpush.msrb.mxu2 %v3212_v25  ;;  %1732 = vmatpush.msra.mxu1 %v2380_v51  ;;  %v2421_v51 = vld [vmem:[%s3465_s2 + $0x450] sm:$0xff] }
 0x309   : > { %1853 = vmatpush.msrb.mxu2 %v3218_v30  ;;  %1733 = vmatpush.msra.mxu1 %v2379_v53 }
 0x30a   : > { %2388 = vmatmul.msk.f32.vlgmr.msra.gmra.mxu2 %vm221_vm0, %v2689_v12  ;;  %v2363_v12 = vld [vmem:[%s3465_s2 + $0x338] sm:$0xff] }
 0x30b   : > { %1948 = vmatpush.msra.mxu2 %v3194_v15  ;;  %1734 = vmatpush.msra.mxu1 %v2378_v57 }
 0x30d   : > { %1949 = vmatpush.msra.mxu2 %v3204_v18  ;;  %1735 = vmatpush.msra.mxu1 %v2377_v60 }
 0x30f   : > { %1950 = vmatpush.msra.mxu2 %v3212_v25 }
 0x311   : > { %1951 = vmatpush.msra.mxu2 %v3218_v30 }
 0x312   : > { %2400 = vmatmul.msk.f32.vlgmr.msrb.gmra.mxu2 %vm221_vm0, %v2727_v19  ;;  %v2361_v19 = vld [vmem:[%s3465_s2 + $0x328] sm:$0xff] }
 0x313   : > { %2046 = vmatpush.msrb.mxu2 %v3194_v15 }
 0x315   : > { %2047 = vmatpush.msrb.mxu2 %v3204_v18 }
 0x317   : > { %2048 = vmatpush.msrb.mxu2 %v3212_v25 }
 0x319   : > { %2049 = vmatpush.msrb.mxu2 %v3218_v30 }
 0x31a   : > { %2412 = vmatmul.msk.f32.vlgmr.msra.gmra.mxu2 %vm221_vm0, %v2737_v20 }
 0x322   : > { %2424 = vmatmul.msk.f32.vlgmr.msrb.gmra.mxu2 %vm221_vm0, %v2745_v21  ;;  %v2385_v21 = vld [vmem:[%s3465_s2 + $0x398] sm:$0xff] }
 0x323   : > { %1709 = vmatpush.msra.mxu0 %v2385_v21 }
 0x325   : > { %1710 = vmatpush.msra.mxu0 %v2384_v52  ;;  %v2419_v52 = vld [vmem:[%s3465_s2 + $0x440] sm:$0xff] }
 0x327   : > { %1711 = vmatpush.msra.mxu0 %v2383_v56 }
 0x329   : > { %1712 = vmatpush.msra.mxu0 %v2382_v59 }
 0x32b   : > { %1801 = vmatpush.msrb.mxu0 %v3194_v15 }
 0x32d   : > { %1802 = vmatpush.msrb.mxu0 %v3204_v18 }
 0x32f   : > { %1803 = vmatpush.msrb.mxu0 %v3212_v25 }
 0x331   : > { %1804 = vmatpush.msrb.mxu0 %v3218_v30 }
 0x356   : > { %v1169_v22 = vpop.xlane.xlu0 %1168 }
 0x357   : > { %v1170_v28 = vrot.slane %v1169_v22, 4 }
 0x359   : > { %v1171_v32 = vadd.f32 %v1170_v28, %v1169_v22 }
 0x35b   : > { %v1172_v35 = vrot.slane %v1171_v32, 2 }
 0x35d   : > { %v1173_v36 = vadd.f32 %v1172_v35, %v1171_v32  ;;  %v2395_v32 = vld [vmem:[%s3465_s2 + $0x3c0] sm:$0xff]  ;;  %v2414_v35 = vld [vmem:[%s3465_s2 + $0x428] sm:$0xff] }
 0x35f   : > { %v1174_v40 = vrot.slane %v1173_v36, 1 }
 0x361   : > { %v1175_v41 = vadd.f32 %v1174_v40, %v1173_v36  ;;  %v2409_v36 = vld [vmem:[%s3465_s2 + $0x410] sm:$0xff]  ;;  %v2428_v40 = vld [vmem:[%s3465_s2 + $0x478] sm:$0xff] }
 0x363   : > { %2439 = vpush %v1175_v41  ;;  %v2407_v41 = vld [vmem:[%s3465_s2 + $0x400] sm:$0xff] }
 0x365   : > { %v3250_v47 = vpop.f32.mrf.mxu2 }
 0x366   : > { %v1278_v63 = vadd.f32 %v1277_v61, %v3250_v47  ;;  %v2425_v47 = vld [vmem:[%s3465_s2 + $0x460] sm:$0xff] }
 0x368   : > { %v1328_v1 = vadd.f32 %v1325_v55, %v1278_v63 }
 0x36d   : > { %v1346_v38 = vpop.f32.mrf.mxu2 }
 0x36e   : > { %2340 = vmatmul.msk.f32.vlgmr.msra.gmra.mxu3 %vm221_vm0, %v1346_v38 }
 0x36f   : > { %1565 = vmatpush.msra.mxu3 %v2363_v12 }
 0x370   : > { %v1423_v62 = vpop.f32.mrf.mxu1 }
 0x371   : > { %1566 = vmatpush.msra.mxu3 %v2362_v42 }
 0x373   : > { %1567 = vmatpush.msra.mxu3 %v2361_v19 }
 0x375   : > { %v1444_v46 = vpop.f32.mrf.mxu2  ;;  %1568 = vmatpush.msra.mxu3 %v2360_v44 }
 0x376   : > { %2352 = vmatmul.msk.f32.vlgmr.msrb.gmra.mxu3 %vm221_vm0, %v1444_v46 }
 0x377   : > { %1681 = vmatpush.msrb.mxu3 %v3194_v15 }
 0x378   : > { %v1521_v3 = vpop.f32.mrf.mxu1 }
 0x379   : > { %1682 = vmatpush.msrb.mxu3 %v3204_v18 }
 0x37b   : > { %1683 = vmatpush.msrb.mxu3 %v3212_v25 }
 0x37d   : > { %v1542_v20 = vpop.f32.mrf.mxu2  ;;  %1684 = vmatpush.msrb.mxu3 %v3218_v30 }
 0x37e   : > { %2364 = vmatmul.msk.f32.vlgmr.msra.gmra.mxu3 %vm221_vm0, %v1542_v20 }
 0x37f   : > { %1780 = vmatpush.msra.mxu3 %v2392_v48 }
 0x381   : > { %1781 = vmatpush.msra.mxu3 %v2391_v50  ;;  %v2422_v50 = vld [vmem:[%s3465_s2 + $0x458] sm:$0xff] }
 0x383   : > { %v1619_v9 = vpop.f32.mrf.mxu1 }
 0x385   : > { %v1661_v49 = vpop.f32.mrf.mxu2 }
 0x386   : > { %2381 = vmatmul.msk.f32.vlgmr.msrb.gmra.mxu3 %vm221_vm0, %v2675_v11  ;;  %v2390_v11 = vld [vmem:[%s3465_s2 + $0x3a8] sm:$0xff]  ;;  %2387 = vmatmul.msk.f32.vlgmr.msra.gmra.mxu1 %vm221_vm0, %v1661_v49 }
 0x387   : > { %1782 = vmatpush.msra.mxu3 %v2390_v11  ;;  %v2420_v11 = vld [vmem:[%s3465_s2 + $0x448] sm:$0xff] }
 0x389   : > { %1783 = vmatpush.msra.mxu3 %v2389_v54 }
 0x38b   : > { %1878 = vmatpush.msrb.mxu3 %v2404_v29 }
 0x38d   : > { %v1757_v58 = vpop.f32.mrf.mxu2 }
 0x38e   : > { %2393 = vmatmul.msk.f32.vlgmr.msra.gmra.mxu3 %vm221_vm0, %v1757_v58 }
 0x394   : > { %s2440_s10 = spop %2439 }
 0x3f1   : > { %v1374_v0 = vpop.f32.mrf.mxu3 }
 0x3f2   : > { %v1377_v2 = vadd.f32 %v1374_v0, %v1328_v1 }
 0x3f4   : > { %v1426_v5 = vadd.f32 %v1423_v62, %v1377_v2 }
 0x3f9   : > { %v1472_v4 = vpop.f32.mrf.mxu3 }
 0x3fa   : > { %v1475_v6 = vadd.f32 %v1472_v4, %v1426_v5 }
 0x3fc   : > { %v1524_v7 = vadd.f32 %v1521_v3, %v1475_v6  ;;  %v2430_v6 = vld [vmem:[%s2956_s27 + $0x18] sm:$0x3f]  ;;  %s2432_s27 = sshll.u32 %s2594_s19, 3  ;;  %s2101_s19 = scalar_lea.sflag [#allocation3], %s203_s8 }
 0x3fd   : > { %s2111_s20 = scalar_lea.hbm %s3467_s4, %s2432_s27 }
 0x3fe   : > { %s2115_s5 = sshll.u32 %s2111_s20, 4  ;;  %s2116_s5 = int_to_ptr.hbm [resolvable:$true] %s2115_s5 }
 0x3ff   : > { %s2498_s29 = sshra.s32 %s2116_s5, 4  ;;  %s2499_s29 = int_to_ptr.hbm [resolvable:$true] %s2498_s29 }
 0x400   : > { %s2500_s30 = scalar_lea.hbm %s2499_s29, 8  ;;  %p2505_p0 = scmp.lt.s32.totalorder %s2499_s29, %s3467_s4 }
 0x401   : > { %v1570_v8 = vpop.f32.mrf.mxu3  ;;  %p2501_p11 = scmp.ne.s32.totalorder %s2499_s29, %s2500_s30 }
 0x402   : > { %v1573_v13 = vadd.f32 %v1570_v8, %v1524_v7 }
 0x403   : > { %v1737_v56 = vpop.f32.mrf.mxu1  ;;  %p2502_p12 = pnand %p2501_p11, %p2611_p5 }
 0x404   : > { %v1622_v16 = vadd.f32 %v1619_v9, %v1573_v13 }
 0x405   : > { %p2503_p13 = pneg %p2502_p12 }
 0x406   : > { %v1625_v17 = vsub.f32 %v1622_v16, %v2371_v14 }
 0x408   : > { %v1626_v22 = vand.u32 2147483647, %v1625_v17 }
 0x409   : > { %v1686_v23 = vpop.f32.mrf.mxu3 }
 0x40a   : > { %2386 = vmatmul.msk.f32.vlgmr.msra.gmra.mxu0 %vm221_vm0, %v1686_v23  ;;  %v1627_v28 = vsel %vm706_vm1, %v1626_v22, 0.0 }
 0x40b   : > { %1628 = vadd.xlane.f32.xlu1 %v1627_v28  ;;  %1899 = vmatpush.msra.mxu0 %v3194_v15 }
 0x40d   : > { %1900 = vmatpush.msra.mxu0 %v3204_v18 }
 0x40f   : > { %1901 = vmatpush.msra.mxu0 %v3212_v25 }
 0x411   : > { %1902 = vmatpush.msra.mxu0 %v3218_v30  ;;  %v1785_v55 = vpop.f32.mrf.mxu3 }
 0x412   : > { %2394 = vmatmul.msk.f32.vlgmr.msrb.gmra.mxu0 %vm221_vm0, %v2756_v24  ;;  %v2403_v24 = vld [vmem:[%s3465_s2 + $0x3f0] sm:$0xff] }
 0x413   : > { %1997 = vmatpush.msrb.mxu0 %v3194_v15  ;;  %1879 = vmatpush.msrb.mxu3 %v2403_v24  ;;  %v2398_v15 = vld [vmem:[%s3465_s2 + $0x3d8] sm:$0xff]  ;;  %v1177_v24 = vstv %s2440_s10 }
 0x414   : > { %1829 = vmatpush.msrb.mxu1 %v2398_v15  ;;  %v717_v15 = vstv %s2438_s9  ;;  %s2504_s9 = scalar_lea.hbm %s3467_s4, 16 }
 0x415   : > { %1998 = vmatpush.msrb.mxu0 %v3204_v18  ;;  %v2401_v18 = vld [vmem:[%s3465_s2 + $0x3e0] sm:$0xff]  ;;  %p2506_p1 = scmp.lt.s32.totalorder %s2504_s9, %s2500_s30 }
 0x417   : > { %1999 = vmatpush.msrb.mxu0 %v3212_v25  ;;  %v1855_v25 = vpop.f32.mrf.mxu2  ;;  %p2507_p2 = por %p2506_p1, %p2505_p0 }
 0x419   : > { %2000 = vmatpush.msrb.mxu0 %v3218_v30  ;;  %v2396_v30 = vld [vmem:[%s3465_s2 + $0x3c8] sm:$0xff]  ;;  %p2508_p3 = pnand %p2507_p2, %p2503_p13 }
 0x41a   : > { %2406 = vmatmul.msk.f32.vlgmr.msra.gmra.mxu0 %vm221_vm0, %v2768_v26  ;;  %v2402_v26 = vld [vmem:[%s3465_s2 + $0x3e8] sm:$0xff] }
 0x41b   : > { %1880 = vmatpush.msrb.mxu3 %v2402_v26 }
 0x41d   : > { %1881 = vmatpush.msrb.mxu3 %v2401_v18 }
 0x41e   : > { %2405 = vmatmul.msk.f32.vlgmr.msrb.gmra.mxu3 %vm221_vm0, %v1855_v25 }
 0x41f   : > { %1976 = vmatpush.msra.mxu3 %v2416_v31  ;;  %v1953_v10 = vpop.f32.mrf.mxu2 }
 0x421   : > { %1977 = vmatpush.msra.mxu3 %v2415_v33 }
 0x422   : > { %2418 = vmatmul.msk.f32.vlgmr.msrb.gmra.mxu0 %vm221_vm0, %v2777_v27  ;;  %v2397_v27 = vld [vmem:[%s3465_s2 + $0x3d0] sm:$0xff] }
 0x423   : > { %1830 = vmatpush.msrb.mxu1 %v2397_v27  ;;  %1978 = vmatpush.msra.mxu3 %v2414_v35  ;;  %v1178_v27 = vadd.f32 %v1177_v24, %v717_v15 }
 0x425   : > { %1831 = vmatpush.msrb.mxu1 %v2396_v30  ;;  %1979 = vmatpush.msra.mxu3 %v2413_v37 }
 0x426   : > { %2417 = vmatmul.msk.f32.vlgmr.msra.gmra.mxu3 %vm221_vm0, %v1953_v10 }
 0x427   : > { %1832 = vmatpush.msrb.mxu1 %v2395_v32  ;;  %2074 = vmatpush.msrb.mxu3 %v2428_v40  ;;  %v2051_v12 = vpop.f32.mrf.mxu2 }
 0x429   : > { %1927 = vmatpush.msra.mxu1 %v2410_v34  ;;  %2075 = vmatpush.msrb.mxu3 %v2427_v43 }
 0x42b   : > { %1928 = vmatpush.msra.mxu1 %v2409_v36  ;;  %2076 = vmatpush.msrb.mxu3 %v2426_v45 }
 0x42d   : > { %1929 = vmatpush.msra.mxu1 %v2408_v39  ;;  %2077 = vmatpush.msrb.mxu3 %v2425_v47 }
 0x42e   : > { %2429 = vmatmul.msk.f32.vlgmr.msrb.gmra.mxu3 %vm221_vm0, %v2051_v12 }
 0x42f   : > { %1930 = vmatpush.msra.mxu1 %v2407_v41 }
 0x47e   : > { %v1629_v38 = vpop.xlane.xlu1 %1628 }
 0x47f   : > { %v1630_v42 = vrot.slane %v1629_v38, 4 }
 0x481   : > { %v1631_v19 = vadd.f32 %v1630_v42, %v1629_v38 }
 0x483   : > { %v1632_v44 = vrot.slane %v1631_v19, 2 }
 0x485   : > { %v1633_v46 = vadd.f32 %v1632_v44, %v1631_v19 }
 0x487   : > { %v1714_v20 = vpop.f32.mrf.mxu0  ;;  %v1634_v48 = vrot.slane %v1633_v46, 1 }
 0x488   : > { %v1738_v58 = vadd.f32 %v1737_v56, %v1714_v20 }
 0x489   : > { %v1635_v49 = vadd.f32 %v1634_v48, %v1633_v46 }
 0x48a   : > { %v1788_v60 = vadd.f32 %v1785_v55, %v1738_v58 }
 0x48b   : > { %2441 = vpush %v1635_v49 }
 0x48f   : > { %v1806_v21 = vpop.f32.mrf.mxu0 }
 0x490   : > { %2399 = vmatmul.msk.f32.vlgmr.msrb.gmra.mxu1 %vm221_vm0, %v1806_v21 }
 0x491   : > { %2025 = vmatpush.msrb.mxu1 %v2422_v50 }
 0x493   : > { %2026 = vmatpush.msrb.mxu1 %v2421_v51 }
 0x495   : > { %2027 = vmatpush.msrb.mxu1 %v2420_v11 }
 0x497   : > { %v1904_v53 = vpop.f32.mrf.mxu0  ;;  %2028 = vmatpush.msrb.mxu1 %v2419_v52 }
 0x498   : > { %2411 = vmatmul.msk.f32.vlgmr.msra.gmra.mxu1 %vm221_vm0, %v1904_v53 }
 0x49f   : > { %v2002_v54 = vpop.f32.mrf.mxu0 }
 0x4a0   : > { %2423 = vmatmul.msk.f32.vlgmr.msrb.gmra.mxu1 %vm221_vm0, %v2002_v54 }
 0x4a1   : > { %v1883_v57 = vpop.f32.mrf.mxu3 }
 0x4a9   : > { %v1981_v62 = vpop.f32.mrf.mxu3 }
 0x4b1   : > { %v2079_v4 = vpop.f32.mrf.mxu3 }
 0x4bc   : > { %s2442_s12 = spop %2441 }
 0x4bd   : > { %v1637_v26 = vstv %s2442_s12 }
 0x4be   : > { %v1638_v18 = vadd.f32 %v1637_v26, %v1178_v27 }
 0x50d   : > { %v1834_v59 = vpop.f32.mrf.mxu1 }
 0x50e   : > { %v1837_v61 = vadd.f32 %v1834_v59, %v1788_v60 }
 0x510   : > { %v1886_v0 = vadd.f32 %v1883_v57, %v1837_v61 }
 0x515   : > { %v1932_v63 = vpop.f32.mrf.mxu1 }
 0x516   : > { %v1935_v1 = vadd.f32 %v1932_v63, %v1886_v0 }
 0x518   : > { %v1984_v2 = vadd.f32 %v1981_v62, %v1935_v1 }
 0x51d   : > { %v2030_v3 = vpop.f32.mrf.mxu1 }
 0x51e   : > { %v2033_v5 = vadd.f32 %v2030_v3, %v1984_v2 }
 0x520   : > { %v2082_v7 = vadd.f32 %v2079_v4, %v2033_v5 }
 0x522   : > { %v2085_v8 = vsub.f32 %v2082_v7, %v2430_v6 }
 0x524   : > { %v2086_v9 = vand.u32 2147483647, %v2085_v8 }
 0x526   : > { %v2087_v13 = vsel %vm706_vm1, %v2086_v9, 0.0 }
 0x527   : > { %2088 = vadd.xlane.f32.xlu1 %v2087_v13 }
 0x59a   : > { %v2089_v14 = vpop.xlane.xlu1 %2088 }
 0x59b   : > { %v2090_v16 = vrot.slane %v2089_v14, 4 }
 0x59d   : > { %v2091_v17 = vadd.f32 %v2090_v16, %v2089_v14 }
 0x59f   : > { %v2092_v22 = vrot.slane %v2091_v17, 2 }
 0x5a1   : > { %v2093_v23 = vadd.f32 %v2092_v22, %v2091_v17 }
 0x5a3   : > { %v2094_v28 = vrot.slane %v2093_v23, 1 }
 0x5a5   : > { %v2095_v29 = vadd.f32 %v2094_v28, %v2093_v23 }
 0x5a7   : > { %2443 = vpush %v2095_v29 }
 0x5d8   : > { %s2444_s28 = spop %2443 }
 0x5d9   : > { %v2097_v25 = vstv %s2444_s28 }
 0x5da   : > { %v2098_v30 = vadd.f32 %v2097_v25, %v1638_v18 }
 0x5dc   : > { %2099 = vst [vmem:[%s205_s23] sm:$0xff] %v2098_v30 }
 0x5dd   : > { %2511 = shalt.err (!%p2508_p3)
}
 0x5de   : > { %2445 = dma.vmem_to_hbm [thread:$0]  (%p2611_p5), %s2114_s22, 128, %s2116_s5, %s2101_s19  }
 0x5df PF: > { %p2451_p4 = scmp.ge.s32.totalorder %s2546_s18, 2  ;;  %s2127_s8 = sand.u32 1, %s2534_s15  }
 0x5e0   : > { %s2128_s27 = scalar_lea.sflag [#allocation3], %s2127_s8 }
 0x5e1   : > { %p2448_p7 = pnand %p2451_p4, %p2615_p6 }
 0x5e3   : > { %p2449_p8 = pneg %p2448_p7 }
 0x5e5   : > { %2529 = dma.done.wait (%p2449_p8), %s2128_s27, 128  }
 0x5e6   : > { %2531 = vsyncadd (%p2449_p8), %s2128_s27, 4294967168  ;;  %p14_p9 = scmp.ge.s32.totalorder %s2598_s21, 4   ;;  %s3470_s15 = smov %s2538_s16 }
 0x5e7   : > { %s3471_s16 = smov %s2542_s17  ;;  %s3472_s17 = smov %s2609_s24 }
 0x5e8   : > { %s3473_s18 = smov %s2598_s21  ;;  %16 = sbr.rel (!%p14_p9) target bundleno = 3 (0x3), region = 123 }
 0x5ed   :  { %2134 = vsyncpa [#allocation3], 1 }
 0x5ee   :  { %2136 = vsyncpa [#allocation3 + $0x1], 1 }

</bundles_post_ra>
